<compile_context>
chip_gen: v7x
topology: tpu7x:2x2x1
jax: 0.10.0
libtpu: 0.0.40
codegen_flags: <defaults>
</compile_context>

<pallas_src>
import jax
import jax.numpy as jnp
from jax.experimental import pallas as pl
from jax.experimental.pallas import tpu as pltpu

KH = KW = 3  # both convs are 3x3, stride 1, no padding ("VALID")


def conv2dc_kernel(x_ref, w1_ref, b1_ref, w2_ref, o_ref):
    """Fused Conv2d(1->32)+bias then Conv2d(32->64) for B_t images.

    x_ref  : (B_t, H, W, 1)     input tile (NHWC, Cin = 1)
    w1_ref : (9, 32)            conv1 weight, tap-major (f32)
    b1_ref : (1, 32)            conv1 bias (f32)
    w2_ref : (288, 64)          conv2 weight as im2col matrix (bf16)
    o_ref  : (B_t*H2*W2, 64)    output rows, row = b*H2*W2 + h2*W2 + w2
    """
    B, H, W, _ = x_ref.shape
    H1, W1 = H - (KH - 1), W - (KW - 1)          # after conv1
    H2, W2 = H1 - (KH - 1), W1 - (KW - 1)        # after conv2
    C1 = w1_ref.shape[-1]                        # 32

    x = x_ref[...].astype(jnp.float32)           # (B, H, W, 1)
    w1 = w1_ref[...].astype(jnp.float32)         # (9, C1)
    b1 = b1_ref[...].astype(jnp.float32)         # (1, C1)

    # ---- conv1 on the VPU (f32 everywhere: v5e has no bf16 VALU). ----------
    # Bias folded into the accumulator init -> one fewer elementwise pass.
    acc1 = jnp.broadcast_to(b1, (B, H1, W1, C1))
    for a in range(KH):
        for b_ in range(KW):
            tap = a * KW + b_
            patch = x[:, a:a + H1, b_:b_ + W1, :]        # (B, H1, W1, 1)
            acc1 = acc1 + patch * w1[tap:tap + 1, :]     # lane-broadcast MAC
    # NOTE: for much larger spatial tiles, accumulate into a VMEM scratch in
    # 8-row bands instead of holding the whole acc1 in vregs.

    # ---- conv2 as ONE im2col matmul on the MXU (K = 9*C1 = 288). -----------
    # Slices shift only sublane/outer dims; concat grows the lane dim; the
    # final reshape keeps the minor dim (288) -> all proven-to-lower patterns.
    cols = [acc1[:, k:k + H2, l:l + W2, :]               # (B, H2, W2, C1)
            for k in range(KH) for l in range(KW)]
    lhs = jnp.concatenate(cols, axis=-1)                 # (B, H2, W2, 288)
    lhs = lhs.reshape(B * H2 * W2, KH * KW * C1)         # (M, 288), minor dim kept
    lhs = lhs.astype(jnp.bfloat16)                       # bf16 operands, f32 accum
    out = jnp.dot(lhs, w2_ref[...], preferred_element_type=jnp.float32)  # (M, 64)
    o_ref[...] = out.astype(o_ref.dtype)


def conv2dc_forward(x_nchw, w1_oihw, b1, w2_oihw):
    """Accepts PyTorch-convention NCHW / OIHW arrays, returns NCHW output."""
    N, Cin, H, W = x_nchw.shape
    if Cin != 1:
        raise ValueError("Conv2dC expects a single input channel")
    if H < 2 * (KH - 1) + 1 or W < 2 * (KW - 1) + 1:
        raise ValueError("spatial dims must be >= 5 for two VALID 3x3 convs")

    C1 = w1_oihw.shape[0]                                # 32
    C2 = w2_oihw.shape[0]                                # 64
    H1, W1 = H - (KH - 1), W - (KW - 1)
    H2, W2 = H1 - (KH - 1), W1 - (KW - 1)

    # NCHW -> NHWC.  Cin == 1, so this is a pure reshape (no data movement),
    # and the trailing singleton becomes conv1's lane-broadcast axis.
    x = x_nchw.reshape(N, H, W, 1)
    # conv1 weight OIHW (C1,1,3,3) -> tap-major (9, C1).
    w1_flat = jnp.transpose(w1_oihw.reshape(C1, KH * KW), (1, 0))
    b1_2d = b1.reshape(1, C1)
    # conv2 weight OIHW -> HWIO -> (9*C1, C2) im2col matrix, bf16 for the MXU.
    w2_flat = (jnp.transpose(w2_oihw, (2, 3, 1, 0))
               .reshape(KH * KW * C1, C2).astype(jnp.bfloat16))

    # Fold B_t images into each grid step (bigger matmul M), but keep >= 2
    # parallel steps so both v7x TensorCores get work (harmless on v5e/v6e,
    # where the grid is just a sequential loop with ~0.35us/step overhead).
    B_t = N // 2 if (N >= 2 and N % 2 == 0) else 1
    if (B_t * H2 * W2) % 8 != 0:      # keep block sublane dim 8-aligned
        B_t = N
    G = N // B_t
    M_t = B_t * H2 * W2

    out_rows = pl.pallas_call(
        conv2dc_kernel,
        out_shape=jax.ShapeDtypeStruct((N * H2 * W2, C2), x_nchw.dtype),
        grid=(G,),
        in_specs=[
            pl.BlockSpec((B_t, H, W, 1), lambda n: (n, 0, 0, 0)),
            pl.BlockSpec((KH * KW, C1), lambda n: (0, 0)),
            pl.BlockSpec((1, C1), lambda n: (0, 0)),
            pl.BlockSpec((KH * KW * C1, C2), lambda n: (0, 0)),
        ],
        # Flat row-major output block: sublane-dense stores (M_t % 8 == 0) and
        # one contiguous HBM region per grid step.
        out_specs=pl.BlockSpec((M_t, C2), lambda n: (n, 0)),
        compiler_params=pltpu.CompilerParams(
            dimension_semantics=("parallel",)),
    )(x, w1_flat, b1_2d, w2_flat)

    out = out_rows.reshape(N, H2, W2, C2)        # NHWC
    return jnp.transpose(out, (0, 3, 1, 2))      # NCHW


if __name__ == "__main__":
    key = jax.random.PRNGKey(0)
    k_x, k_w1, k_b1, k_w2 = jax.random.split(key, 4)

    # Small shapes consistent with Conv2dC: in_channels of the first conv is 1.
    N, Cin, H, W = 2, 1, 16, 16
    x = jax.random.normal(k_x, (N, Cin, H, W), jnp.float32)

    # Deterministic synthetic parameters (PyTorch OIHW layout).
    w1 = jax.random.normal(k_w1, (32, 1, 3, 3), jnp.float32) * 0.1
    b1 = jax.random.normal(k_b1, (32,), jnp.float32) * 0.1
    w2 = jax.random.normal(k_w2, (64, 32, 3, 3), jnp.float32) * 0.05

    out = conv2dc_forward(x, w1, b1, w2)
    out = jax.block_until_ready(out)

    # Pure-JAX f32 reference matching PyTorch semantics (NCHW, VALID, stride 1).
    ref1 = jax.lax.conv_general_dilated(
        x, w1, window_strides=(1, 1), padding="VALID",
        dimension_numbers=("NCHW", "OIHW", "NCHW"),
    ) + b1[None, :, None, None]
    ref = jax.lax.conv_general_dilated(
        ref1, w2, window_strides=(1, 1), padding="VALID",
        dimension_numbers=("NCHW", "OIHW", "NCHW"),
    )

    assert out.shape == (N, 64, H - 4, W - 4), out.shape
    # conv2 uses bf16 MXU operands (f32 accumulation), so compare against the
    # f32 reference at bf16-level tolerance.
    max_err = float(jnp.max(jnp.abs(out - ref)))
    assert jnp.allclose(out, ref, atol=2e-2, rtol=2e-2), f"mismatch, max_err={max_err}"
    print("KERNEL_OK")
</pallas_src>

<mosaic_0001>
module attributes {stable_mosaic.version = 11 : i64} {
  func.func @conv2dc_kernel(%arg0: i32, %arg1: memref<1x16x16x1xf32, #tpu.memory_space<vmem>>, %arg2: memref<9x32xf32, #tpu.memory_space<vmem>>, %arg3: memref<1x32xf32, #tpu.memory_space<vmem>>, %arg4: memref<288x64xbf16, #tpu.memory_space<vmem>>, %arg5: memref<144x64xf32, #tpu.memory_space<vmem>>) attributes {dimension_semantics = [#tpu.dimension_semantics<parallel>], iteration_bounds = array<i64: 2>, scalar_prefetch = 0 : i64, scratch_operands = 0 : i64, tpu.core_type = #tpu.core_type<tc>, window_params = [{transform_indices = @transform_0, window_bounds = array<i64: 1, 16, 16, 1>}, {pipeline_mode = #tpu.pipeline_mode<synchronous>, transform_indices = @transform_1, window_bounds = array<i64: 9, 32>}, {pipeline_mode = #tpu.pipeline_mode<synchronous>, transform_indices = @transform_2, window_bounds = array<i64: 1, 32>}, {pipeline_mode = #tpu.pipeline_mode<synchronous>, transform_indices = @transform_3, window_bounds = array<i64: 288, 64>}, {transform_indices = @transform_4, window_bounds = array<i64: 144, 64>}]} {
    %c0 = arith.constant 0 : index
    %c0_0 = arith.constant 0 : index
    %c0_1 = arith.constant 0 : index
    %c0_2 = arith.constant 0 : index
    %0 = vector.load %arg1[%c0, %c0_0, %c0_1, %c0_2] : memref<1x16x16x1xf32, #tpu.memory_space<vmem>>, vector<1x16x16x1xf32>
    %c0_3 = arith.constant 0 : index
    %c0_4 = arith.constant 0 : index
    %1 = vector.load %arg2[%c0_3, %c0_4] : memref<9x32xf32, #tpu.memory_space<vmem>>, vector<9x32xf32>
    %c0_5 = arith.constant 0 : index
    %c0_6 = arith.constant 0 : index
    %2 = vector.load %arg3[%c0_5, %c0_6] : memref<1x32xf32, #tpu.memory_space<vmem>>, vector<1x32xf32>
    %3 = vector.shape_cast %2 : vector<1x32xf32> to vector<1x1x1x32xf32>
    %4 = vector.broadcast %3 : vector<1x1x1x32xf32> to vector<1x14x14x32xf32>
    %5 = vector.extract_strided_slice %0 {offsets = [0, 0, 0, 0], sizes = [1, 14, 14, 1], strides = [1, 1, 1, 1]} : vector<1x16x16x1xf32> to vector<1x14x14x1xf32>
    %6 = vector.extract_strided_slice %1 {offsets = [0, 0], sizes = [1, 32], strides = [1, 1]} : vector<9x32xf32> to vector<1x32xf32>
    %7 = vector.shape_cast %6 : vector<1x32xf32> to vector<1x1x1x32xf32>
    %8 = vector.broadcast %5 : vector<1x14x14x1xf32> to vector<1x14x14x32xf32>
    %9 = vector.broadcast %7 : vector<1x1x1x32xf32> to vector<1x14x14x32xf32>
    %10 = arith.mulf %8, %9 : vector<1x14x14x32xf32>
    %11 = arith.addf %4, %10 : vector<1x14x14x32xf32>
    %12 = vector.extract_strided_slice %0 {offsets = [0, 0, 1, 0], sizes = [1, 14, 14, 1], strides = [1, 1, 1, 1]} : vector<1x16x16x1xf32> to vector<1x14x14x1xf32>
    %13 = vector.extract_strided_slice %1 {offsets = [1, 0], sizes = [1, 32], strides = [1, 1]} : vector<9x32xf32> to vector<1x32xf32>
    %14 = vector.shape_cast %13 : vector<1x32xf32> to vector<1x1x1x32xf32>
    %15 = vector.broadcast %12 : vector<1x14x14x1xf32> to vector<1x14x14x32xf32>
    %16 = vector.broadcast %14 : vector<1x1x1x32xf32> to vector<1x14x14x32xf32>
    %17 = arith.mulf %15, %16 : vector<1x14x14x32xf32>
    %18 = arith.addf %11, %17 : vector<1x14x14x32xf32>
    %19 = vector.extract_strided_slice %0 {offsets = [0, 0, 2, 0], sizes = [1, 14, 14, 1], strides = [1, 1, 1, 1]} : vector<1x16x16x1xf32> to vector<1x14x14x1xf32>
    %20 = vector.extract_strided_slice %1 {offsets = [2, 0], sizes = [1, 32], strides = [1, 1]} : vector<9x32xf32> to vector<1x32xf32>
    %21 = vector.shape_cast %20 : vector<1x32xf32> to vector<1x1x1x32xf32>
    %22 = vector.broadcast %19 : vector<1x14x14x1xf32> to vector<1x14x14x32xf32>
    %23 = vector.broadcast %21 : vector<1x1x1x32xf32> to vector<1x14x14x32xf32>
    %24 = arith.mulf %22, %23 : vector<1x14x14x32xf32>
    %25 = arith.addf %18, %24 : vector<1x14x14x32xf32>
    %26 = vector.extract_strided_slice %0 {offsets = [0, 1, 0, 0], sizes = [1, 14, 14, 1], strides = [1, 1, 1, 1]} : vector<1x16x16x1xf32> to vector<1x14x14x1xf32>
    %27 = vector.extract_strided_slice %1 {offsets = [3, 0], sizes = [1, 32], strides = [1, 1]} : vector<9x32xf32> to vector<1x32xf32>
    %28 = vector.shape_cast %27 : vector<1x32xf32> to vector<1x1x1x32xf32>
    %29 = vector.broadcast %26 : vector<1x14x14x1xf32> to vector<1x14x14x32xf32>
    %30 = vector.broadcast %28 : vector<1x1x1x32xf32> to vector<1x14x14x32xf32>
    %31 = arith.mulf %29, %30 : vector<1x14x14x32xf32>
    %32 = arith.addf %25, %31 : vector<1x14x14x32xf32>
    %33 = vector.extract_strided_slice %0 {offsets = [0, 1, 1, 0], sizes = [1, 14, 14, 1], strides = [1, 1, 1, 1]} : vector<1x16x16x1xf32> to vector<1x14x14x1xf32>
    %34 = vector.extract_strided_slice %1 {offsets = [4, 0], sizes = [1, 32], strides = [1, 1]} : vector<9x32xf32> to vector<1x32xf32>
    %35 = vector.shape_cast %34 : vector<1x32xf32> to vector<1x1x1x32xf32>
    %36 = vector.broadcast %33 : vector<1x14x14x1xf32> to vector<1x14x14x32xf32>
    %37 = vector.broadcast %35 : vector<1x1x1x32xf32> to vector<1x14x14x32xf32>
    %38 = arith.mulf %36, %37 : vector<1x14x14x32xf32>
    %39 = arith.addf %32, %38 : vector<1x14x14x32xf32>
    %40 = vector.extract_strided_slice %0 {offsets = [0, 1, 2, 0], sizes = [1, 14, 14, 1], strides = [1, 1, 1, 1]} : vector<1x16x16x1xf32> to vector<1x14x14x1xf32>
    %41 = vector.extract_strided_slice %1 {offsets = [5, 0], sizes = [1, 32], strides = [1, 1]} : vector<9x32xf32> to vector<1x32xf32>
    %42 = vector.shape_cast %41 : vector<1x32xf32> to vector<1x1x1x32xf32>
    %43 = vector.broadcast %40 : vector<1x14x14x1xf32> to vector<1x14x14x32xf32>
    %44 = vector.broadcast %42 : vector<1x1x1x32xf32> to vector<1x14x14x32xf32>
    %45 = arith.mulf %43, %44 : vector<1x14x14x32xf32>
    %46 = arith.addf %39, %45 : vector<1x14x14x32xf32>
    %47 = vector.extract_strided_slice %0 {offsets = [0, 2, 0, 0], sizes = [1, 14, 14, 1], strides = [1, 1, 1, 1]} : vector<1x16x16x1xf32> to vector<1x14x14x1xf32>
    %48 = vector.extract_strided_slice %1 {offsets = [6, 0], sizes = [1, 32], strides = [1, 1]} : vector<9x32xf32> to vector<1x32xf32>
    %49 = vector.shape_cast %48 : vector<1x32xf32> to vector<1x1x1x32xf32>
    %50 = vector.broadcast %47 : vector<1x14x14x1xf32> to vector<1x14x14x32xf32>
    %51 = vector.broadcast %49 : vector<1x1x1x32xf32> to vector<1x14x14x32xf32>
    %52 = arith.mulf %50, %51 : vector<1x14x14x32xf32>
    %53 = arith.addf %46, %52 : vector<1x14x14x32xf32>
    %54 = vector.extract_strided_slice %0 {offsets = [0, 2, 1, 0], sizes = [1, 14, 14, 1], strides = [1, 1, 1, 1]} : vector<1x16x16x1xf32> to vector<1x14x14x1xf32>
    %55 = vector.extract_strided_slice %1 {offsets = [7, 0], sizes = [1, 32], strides = [1, 1]} : vector<9x32xf32> to vector<1x32xf32>
    %56 = vector.shape_cast %55 : vector<1x32xf32> to vector<1x1x1x32xf32>
    %57 = vector.broadcast %54 : vector<1x14x14x1xf32> to vector<1x14x14x32xf32>
    %58 = vector.broadcast %56 : vector<1x1x1x32xf32> to vector<1x14x14x32xf32>
    %59 = arith.mulf %57, %58 : vector<1x14x14x32xf32>
    %60 = arith.addf %53, %59 : vector<1x14x14x32xf32>
    %61 = vector.extract_strided_slice %0 {offsets = [0, 2, 2, 0], sizes = [1, 14, 14, 1], strides = [1, 1, 1, 1]} : vector<1x16x16x1xf32> to vector<1x14x14x1xf32>
    %62 = vector.extract_strided_slice %1 {offsets = [8, 0], sizes = [1, 32], strides = [1, 1]} : vector<9x32xf32> to vector<1x32xf32>
    %63 = vector.shape_cast %62 : vector<1x32xf32> to vector<1x1x1x32xf32>
    %64 = vector.broadcast %61 : vector<1x14x14x1xf32> to vector<1x14x14x32xf32>
    %65 = vector.broadcast %63 : vector<1x1x1x32xf32> to vector<1x14x14x32xf32>
    %66 = arith.mulf %64, %65 : vector<1x14x14x32xf32>
    %67 = arith.addf %60, %66 : vector<1x14x14x32xf32>
    %68 = vector.extract_strided_slice %67 {offsets = [0, 0, 0, 0], sizes = [1, 12, 12, 32], strides = [1, 1, 1, 1]} : vector<1x14x14x32xf32> to vector<1x12x12x32xf32>
    %69 = vector.extract_strided_slice %67 {offsets = [0, 0, 1, 0], sizes = [1, 12, 12, 32], strides = [1, 1, 1, 1]} : vector<1x14x14x32xf32> to vector<1x12x12x32xf32>
    %70 = vector.extract_strided_slice %67 {offsets = [0, 0, 2, 0], sizes = [1, 12, 12, 32], strides = [1, 1, 1, 1]} : vector<1x14x14x32xf32> to vector<1x12x12x32xf32>
    %71 = vector.extract_strided_slice %67 {offsets = [0, 1, 0, 0], sizes = [1, 12, 12, 32], strides = [1, 1, 1, 1]} : vector<1x14x14x32xf32> to vector<1x12x12x32xf32>
    %72 = vector.extract_strided_slice %67 {offsets = [0, 1, 1, 0], sizes = [1, 12, 12, 32], strides = [1, 1, 1, 1]} : vector<1x14x14x32xf32> to vector<1x12x12x32xf32>
    %73 = vector.extract_strided_slice %67 {offsets = [0, 1, 2, 0], sizes = [1, 12, 12, 32], strides = [1, 1, 1, 1]} : vector<1x14x14x32xf32> to vector<1x12x12x32xf32>
    %74 = vector.extract_strided_slice %67 {offsets = [0, 2, 0, 0], sizes = [1, 12, 12, 32], strides = [1, 1, 1, 1]} : vector<1x14x14x32xf32> to vector<1x12x12x32xf32>
    %75 = vector.extract_strided_slice %67 {offsets = [0, 2, 1, 0], sizes = [1, 12, 12, 32], strides = [1, 1, 1, 1]} : vector<1x14x14x32xf32> to vector<1x12x12x32xf32>
    %76 = vector.extract_strided_slice %67 {offsets = [0, 2, 2, 0], sizes = [1, 12, 12, 32], strides = [1, 1, 1, 1]} : vector<1x14x14x32xf32> to vector<1x12x12x32xf32>
    %77 = tpu.concatenate %68, %69, %70, %71, %72, %73, %74, %75, %76 in 3 : vector<1x12x12x32xf32>, vector<1x12x12x32xf32>, vector<1x12x12x32xf32>, vector<1x12x12x32xf32>, vector<1x12x12x32xf32>, vector<1x12x12x32xf32>, vector<1x12x12x32xf32>, vector<1x12x12x32xf32>, vector<1x12x12x32xf32> -> vector<1x12x12x288xf32>
    %78 = vector.shape_cast %77 : vector<1x12x12x288xf32> to vector<144x288xf32>
    %79 = arith.truncf %78 : vector<144x288xf32> to vector<144x288xbf16>
    %c0_7 = arith.constant 0 : index
    %c0_8 = arith.constant 0 : index
    %80 = vector.load %arg4[%c0_7, %c0_8] : memref<288x64xbf16, #tpu.memory_space<vmem>>, vector<288x64xbf16>
    %cst = arith.constant dense<0.000000e+00> : vector<144x64xf32>
    %81 = tpu.matmul %79, %80, %cst {dimension_numbers = #tpu.dot_dimension_numbers<[1], [0], [0], [1], [0, 0, 1, 1], [], []>} : vector<144x288xbf16>, vector<288x64xbf16>, vector<144x64xf32> -> vector<144x64xf32>
    %c0_9 = arith.constant 0 : index
    %c0_10 = arith.constant 0 : index
    %82 = vector.load %arg5[%c0_9, %c0_10] : memref<144x64xf32, #tpu.memory_space<vmem>>, vector<144x64xf32>
    tpu.vector_store %arg5[%c0_9, %c0_10], %81 {strides = array<i32>} : memref<144x64xf32, #tpu.memory_space<vmem>>, vector<144x64xf32>,
    return
  }
  func.func @transform_0(%arg0: i32) -> (i32, i32, i32, i32) {
    %c0_i32 = arith.constant 0 : i32
    %c0_i32_0 = arith.constant 0 : i32
    %c0_i32_1 = arith.constant 0 : i32
    %c0_i32_2 = arith.constant 0 : i32
    return %arg0, %c0_i32, %c0_i32_0, %c0_i32_1 : i32, i32, i32, i32
  }
  func.func @transform_1(%arg0: i32) -> (i32, i32) {
    %c0_i32 = arith.constant 0 : i32
    %c0_i32_0 = arith.constant 0 : i32
    %c0_i32_1 = arith.constant 0 : i32
    return %c0_i32, %c0_i32_0 : i32, i32
  }
  func.func @transform_2(%arg0: i32) -> (i32, i32) {
    %c0_i32 = arith.constant 0 : i32
    %c0_i32_0 = arith.constant 0 : i32
    %c0_i32_1 = arith.constant 0 : i32
    return %c0_i32, %c0_i32_0 : i32, i32
  }
  func.func @transform_3(%arg0: i32) -> (i32, i32) {
    %c0_i32 = arith.constant 0 : i32
    %c0_i32_0 = arith.constant 0 : i32
    %c0_i32_1 = arith.constant 0 : i32
    return %c0_i32, %c0_i32_0 : i32, i32
  }
  func.func @transform_4(%arg0: i32) -> (i32, i32) {
    %c0_i32 = arith.constant 0 : i32
    %c0_i32_0 = arith.constant 0 : i32
    return %arg0, %c0_i32 : i32, i32
  }
}

</mosaic_0001>

<bundles_post_ra>
// kernel: tpu_custom_call.1
= control target key start
LH: loop header
LB: loop body
LE: loop exit
PB: predicated region body
PF: predicated region fallthrough
CT: control target
= control target key end

     0   :  { %s3282_s15 = smov 0   ;;  %s5489_s0 = inlined_call_operand.vmem [shape: f32[2,16,16,1], index: 0, kind: input, shape index: {}]   ;;  %s5490_s1 = inlined_call_operand.vmem [shape: f32[9,32], index: 1, kind: input, shape index: {}]   ;;  %s5491_s2 = inlined_call_operand.vmem [shape: f32[1,32], index: 2, kind: input, shape index: {}]   ;;  %s5492_s3 = inlined_call_operand.vmem [shape: bf16[288,64], index: 3, kind: input, shape index: {}]   ;;  %s5493_s4 = inlined_call_operand.vmem [shape: f32[288,64], index: 4, kind: output, shape index: {}]  }
   0x1 LB: > { %s3288_s16 = sadd.s32 4294967295, %s3249_s15   ;;  %p2936_p0 = scmp.ge.s32.totalorder %s3249_s15, 1  ;;  %s3249_s15 = sphi %s3282_s15, %s14_s15  }
   0x2   : > { %p162_p1 = scmp.lt.s32.totalorder %s3249_s15, 3 }
   0x4   : > { %p163_p2 = pnand %p2936_p0, %p162_p1 }
   0x6   : > { %166 = sbr.rel (%p163_p2) target bundleno = 904 (0x388), region = 36 }
   0xd   : > { %p188_p3 = scmp.lt.s32.totalorder %s3288_s16, 1  ;;  %v3251_v0 = vmov 0   ;;  %v5494_v31 = vmov 0.0   ;;  %v3223_v34 = vld [vmem:[%s5492_s3 + $0x80] sm:$0xff]   ;;  %v3224_v35 = vld [vmem:[%s5492_s3 + $0x88] sm:$0xff]   ;;  %vm3253_vm0 = vmmov 0   ;;  %v381_v36 = vlaneseq }
   0xe   : > { %3132 = vset.pattern.permute.xlu1 %v3251_v0  ;;  %3131 = vset.pattern.permute.xlu0 %v3251_v0  ;;  %v232_v39 = vld [vmem:[%s5490_s1] sm:$0xff]  ;;  %vm501_vm1 = vcmask 1046528   ;;  %vm660_vm2 = vcmask 1045504   ;;  %s3254_s6 = smov 96   ;;  %s3255_s7 = smov 64   ;;  %vm2099_vm3 = vcmask 261120  }
   0xf   : > { %s189_s17 = scalar_select %p188_p3, %s3288_s16, 1  ;;  %3077 = vmatprep.subr.bf16.mxu1 %v5494_v31  ;;  %3081 = vmatprep.mubr.msk.bf16.mxu1 %vm3253_vm0, %v5494_v31  ;;  %v382_v37 = vshrl.u32 %v381_v36, 7  ;;  %v3359_v54 = vld [vmem:[%s5491_s2] ss:$0 sm:$0xff]  ;;  %vm2124_vm4 = vcmask 523264   ;;  %vm2149_vm5 = vcmask 785408  }
  0x10   : > { %3078 = vmatpush3.bf16.msra.mxu1 %v3223_v34  ;;  %s3256_s12 = smov 32  }
  0x11   : > { %s2995_s18 = sshll.u32 %s189_s17, 8  ;;  %3079 = vmatprep.subr.bf16.mxu1 %v5494_v31  ;;  %v443_v38 = vsub.s32 1, %v382_v37  ;;  %v383_v40 = vsub.s32 0, %v382_v37  ;;  %v602_v41 = vsub.s32 2, %v382_v37  ;;  %v771_v47 = vsub.s32 3, %v382_v37 }
  0x12   : > { %s3297_s21 = scalar_lea.vmem %s5489_s0, %s2995_s18  ;;  %v831_v48 = vsub.s32 4, %v382_v37  ;;  %v989_v50 = vsub.s32 5, %v382_v37 }
  0x13   : > { %v204_v1 = vld [vmem:[%s3297_s21 + $0x20] sm:$0xff]  ;;  %v202_v2 = vld [vmem:[%s3297_s21 + $0x10] sm:$0xff]  ;;  %v205_v3 = vld [vmem:[%s3297_s21 + $0x28] sm:$0xff]  ;;  %v3344_v42 = vrot.slane %v232_v39, %v443_v38  ;;  %v3346_v43 = vrot.slane %v232_v39, %v383_v40  ;;  %v3350_v46 = vrot.slane %v232_v39, %v602_v41  ;;  %v3364_v58 = vrot.slane %v232_v39, %v771_v47 }
  0x14   : > { %263 = vperm.xlu0 %3131, %v204_v1   ;;  %253 = vperm.xlu1 %3132, %v202_v2   ;;  %v203_v4 = vld [vmem:[%s3297_s21 + $0x18] sm:$0xff]  ;;  %v206_v5 = vld [vmem:[%s3297_s21 + $0x30] sm:$0xff]  ;;  %v201_v7 = vld [vmem:[%s3297_s21 + $0x8] sm:$0xff]  ;;  %v3366_v59 = vrot.slane %v232_v39, %v831_v48  ;;  %v3368_v62 = vrot.slane %v232_v39, %v989_v50 }
  0x15   : > { %v207_v6 = vld [vmem:[%s3297_s21 + $0x38] sm:$0xff]  ;;  %v200_v8 = vld [vmem:[%s3297_s21] sm:$0xff]  ;;  %v209_v9 = vld [vmem:[%s3297_s21 + $0x48] sm:$0xff]  ;;  %3080 = vmatpush3.bf16.msra.mxu1 %v3224_v35 }
  0x16   : > { %v208_v10 = vld [vmem:[%s3297_s21 + $0x40] sm:$0xff]  ;;  %v211_v11 = vld [vmem:[%s3297_s21 + $0x58] sm:$0xff]  ;;  %v210_v12 = vld [vmem:[%s3297_s21 + $0x50] sm:$0xff] }
  0x17   : > { %v213_v13 = vld [vmem:[%s3297_s21 + $0x68] sm:$0xff]  ;;  %v212_v14 = vld [vmem:[%s3297_s21 + $0x60] sm:$0xff]  ;;  %v215_v15 = vld [vmem:[%s3297_s21 + $0x78] sm:$0xff] }
  0x18   : > { %268 = vperm.xlu0 %3131, %v205_v3   ;;  %258 = vperm.xlu1 %3132, %v203_v4   ;;  %v214_v16 = vld [vmem:[%s3297_s21 + $0x70] sm:$0xff]  ;;  %v217_v17 = vld [vmem:[%s3297_s21 + $0x88] sm:$0xff]  ;;  %v216_v18 = vld [vmem:[%s3297_s21 + $0x80] sm:$0xff] }
  0x19   : > { %v219_v19 = vld [vmem:[%s3297_s21 + $0x98] sm:$0xff]  ;;  %v218_v20 = vld [vmem:[%s3297_s21 + $0x90] sm:$0xff]  ;;  %v221_v21 = vld [vmem:[%s3297_s21 + $0xa8] sm:$0xff] }
  0x1a   : > { %v220_v22 = vld [vmem:[%s3297_s21 + $0xa0] sm:$0xff]  ;;  %v223_v23 = vld [vmem:[%s3297_s21 + $0xb8] sm:$0xff]  ;;  %v222_v24 = vld [vmem:[%s3297_s21 + $0xb0] sm:$0xff] }
  0x1b   : > { %v225_v25 = vld [vmem:[%s3297_s21 + $0xc8] sm:$0xff]  ;;  %v224_v26 = vld [vmem:[%s3297_s21 + $0xc0] sm:$0xff]  ;;  %v227_v27 = vld [vmem:[%s3297_s21 + $0xd8] sm:$0xff] }
  0x1c   : > { %273 = vperm.xlu0 %3131, %v206_v5   ;;  %278 = vperm.xlu1 %3132, %v207_v6   ;;  %v226_v28 = vld [vmem:[%s3297_s21 + $0xd0] sm:$0xff]  ;;  %v229_v29 = vld [vmem:[%s3297_s21 + $0xe8] sm:$0xff]  ;;  %v228_v30 = vld [vmem:[%s3297_s21 + $0xe0] sm:$0xff]  ;;  %v1157_v6 = vsub.s32 6, %v382_v37 }
  0x1d   : > { %v231_v32 = vld [vmem:[%s3297_s21 + $0xf8] sm:$0xff]  ;;  %v230_v33 = vld [vmem:[%s3297_s21 + $0xf0] sm:$0xff] }
  0x20   : > { %248 = vperm.xlu1 %3132, %v201_v7   ;;  %243 = vperm.xlu0 %3131, %v200_v8  }
  0x24   : > { %288 = vperm.xlu1 %3132, %v209_v9   ;;  %283 = vperm.xlu0 %3131, %v208_v10   ;;  %v1217_v10 = vsub.s32 7, %v382_v37 }
  0x28   : > { %298 = vperm.xlu1 %3132, %v211_v11   ;;  %293 = vperm.xlu0 %3131, %v210_v12  }
  0x2c   : > { %308 = vperm.xlu1 %3132, %v213_v13   ;;  %303 = vperm.xlu0 %3131, %v212_v14  }
  0x30   : > { %318 = vperm.xlu1 %3132, %v215_v15   ;;  %313 = vperm.xlu0 %3131, %v214_v16  }
  0x34   : > { %328 = vperm.xlu1 %3132, %v217_v17   ;;  %323 = vperm.xlu0 %3131, %v216_v18   ;;  %v3393_v18 = vrot.slane %v232_v39, %v1157_v6 }
  0x38   : > { %338 = vperm.xlu1 %3132, %v219_v19   ;;  %333 = vperm.xlu0 %3131, %v218_v20  }
  0x3c   : > { %348 = vperm.xlu1 %3132, %v221_v21   ;;  %343 = vperm.xlu0 %3131, %v220_v22  }
  0x40   : > { %358 = vperm.xlu1 %3132, %v223_v23   ;;  %353 = vperm.xlu0 %3131, %v222_v24   ;;  %v3402_v23 = vrot.slane %v232_v39, %v1217_v10 }
  0x44   : > { %368 = vperm.xlu1 %3132, %v225_v25   ;;  %363 = vperm.xlu0 %3131, %v224_v26  }
  0x48   : > { %378 = vperm.xlu1 %3132, %v227_v27   ;;  %373 = vperm.xlu0 %3131, %v226_v28  }
  0x4c   : > { %766 = vperm.xlu1 %3132, %v229_v29   ;;  %761 = vperm.xlu0 %3131, %v228_v30  }
  0x50   : > { %1152 = vperm.xlu1 %3132, %v231_v32   ;;  %1147 = vperm.xlu0 %3131, %v230_v33  }
  0x93   : > { %v3348_v44 = vpop.permute.xlu0 %263  ;;  %v254_v45 = vpop.permute.xlu1 %253 }
  0x94   : > { %5606 = vst [vmem:[#allocation2_spill] sm:$0xff] %v3348_v44  ;;  %v447_v49 = vmul.f32 %v3344_v42, %v254_v45  ;;  %v387_v51 = vmul.f32 %v3346_v43, %v254_v45  ;;  %v606_v55 = vmul.f32 %v3350_v46, %v254_v45  ;;  %v389_v7 = vmul.f32 %v3346_v43, %v3348_v44 }
  0x95   : > { %v3381_v8 = vmul.f32 %v3344_v42, %v3348_v44  ;;  %v3385_v11 = vmul.f32 %v3350_v46, %v3348_v44  ;;  %v833_v12 = vmul.f32 %v3366_v59, %v254_v45  ;;  %v3390_v14 = vmul.f32 %v3368_v62, %v254_v45 }
  0x96   : > { %v505_v60 = vrot.slane %v447_v49, 1  ;;  %v415_v63 = vadd.f32 %v3359_v54, %v387_v51  ;;  %v664_v3 = vrot.slane %v606_v55, 2  ;;  %v3396_v19 = vadd.f32 %v3359_v54, %v389_v7 }
  0x97   : > { %v3354_v52 = vpop.permute.xlu0 %268  ;;  %v259_v53 = vpop.permute.xlu1 %258  ;;  %5608 = vst [vmem:[#allocation4_spill] sm:$0xff] %v3390_v14  ;;  %v508_v20 = vrot.slane %v3381_v8, 1  ;;  %v3400_v21 = vmul.f32 %v3364_v58, %v254_v45  ;;  %v889_v25 = vrot.slane %v833_v12, 1  ;;  %v775_v30 = vmul.f32 %v3364_v58, %v3348_v44 }
  0x98   : > { %5607 = vst [vmem:[#allocation3_spill] sm:$0xff] %v3354_v52  ;;  %v448_v56 = vmul.f32 %v3344_v42, %v259_v53  ;;  %v607_v57 = vmul.f32 %v3350_v46, %v259_v53  ;;  %v388_v4 = vmul.f32 %v3346_v43, %v259_v53  ;;  %v3410_v29 = vmul.f32 %v3346_v43, %v3354_v52 }
  0x99   : > { %v3415_v32 = vmul.f32 %v3368_v62, %v259_v53  ;;  %v3420_v35 = vmul.f32 %v3364_v58, %v259_v53  ;;  %v3432_v39 = vmul.f32 %v3366_v59, %v259_v53  ;;  %v776_v40 = vmul.f32 %v3364_v58, %v3354_v52 }
  0x9a   : > { %v506_v61 = vrot.slane %v448_v56, 1  ;;  %v665_v0 = vrot.slane %v607_v57, 2  ;;  %v416_v17 = vadd.f32 %v3359_v54, %v388_v4  ;;  %v835_v47 = vmul.f32 %v3366_v59, %v3348_v44 }
  0x9b   : > { %v3371_v1 = vpop.permute.xlu0 %273  ;;  %v3373_v2 = vpop.permute.xlu1 %278  ;;  %5609 = vst [vmem:[#allocation5_spill] sm:$0xff] %v3415_v32  ;;  %v836_v48 = vmul.f32 %v3366_v59, %v3354_v52 }
  0x9c   : > { %v507_v5 = vsel %vm501_vm1, %v505_v60, %v506_v61  ;;  %v666_v13 = vsel %vm660_vm2, %v664_v3, %v665_v0  ;;  %v575_v33 = vadd.f32 %v506_v61, %v416_v17  ;;  %v391_v34 = vmul.f32 %v3346_v43, %v3371_v1 }
  0x9d   : > { %v574_v9 = vadd.f32 %v507_v5, %v415_v63  ;;  %v3425_v37 = vmul.f32 %v3344_v42, %v3371_v1  ;;  %v3429_v38 = vmul.f32 %v3350_v46, %v3371_v1  ;;  %v3444_v50 = vmul.f32 %v3364_v58, %v3371_v1 }
  0x9e   : > { %v734_v55 = vadd.f32 %v665_v0, %v575_v33  ;;  %v3449_v56 = vadd.f32 %v3359_v54, %v391_v34  ;;  %v3458_v4 = vmul.f32 %v3366_v59, %v3371_v1  ;;  %v5496_v5 = vrot.slane %v3432_v39, 1 }
  0x9f   : > { %v733_v15 = vadd.f32 %v666_v13, %v574_v9  ;;  %v249_v16 = vpop.permute.xlu1 %248  ;;  %v244_v22 = vpop.permute.xlu0 %243  ;;  %v3463_v0 = vmul.f32 %v3346_v43, %v3373_v2  ;;  %v892_v9 = vrot.slane %v835_v47, 1  ;;  %v893_v10 = vrot.slane %v836_v48, 1 }
  0xa0   : > { %v386_v26 = vmul.f32 %v3346_v43, %v249_v16  ;;  %v446_v27 = vmul.f32 %v3344_v42, %v249_v16  ;;  %v445_v36 = vmul.f32 %v3344_v42, %v244_v22  ;;  %v605_v51 = vmul.f32 %v3350_v46, %v249_v16 }
  0xa1   : > { %v385_v53 = vmul.f32 %v3346_v43, %v244_v22  ;;  %v604_v60 = vmul.f32 %v3350_v46, %v244_v22  ;;  %v803_v12 = vadd.f32 %v775_v30, %v733_v15  ;;  %v993_v33 = vmul.f32 %v3368_v62, %v3348_v44 }
  0xa2   : > { %v414_v41 = vadd.f32 %v3359_v54, %v386_v26  ;;  %v503_v45 = vrot.slane %v446_v27, 1  ;;  %v502_v57 = vrot.slane %v445_v36, 1  ;;  %v662_v13 = vrot.slane %v605_v51, 2 }
  0xa3   : > { %v3452_v61 = vpop.permute.xlu0 %283  ;;  %v3465_v7 = vpop.permute.xlu1 %288  ;;  %v413_v16 = vadd.f32 %v3359_v54, %v385_v53  ;;  %v661_v26 = vrot.slane %v604_v60, 2  ;;  %v804_v27 = vadd.f32 %v776_v40, %v734_v55  ;;  %v3477_v36 = vsel %vm501_vm1, %v889_v25, %v5496_v5  ;;  %v3498_v25 = vld [vmem:[%s5490_s1 + $0x8] ss:$0 sm:$0xff] }
  0xa4   : > { %v573_v6 = vadd.f32 %v503_v45, %v414_v41  ;;  %v393_v17 = vmul.f32 %v3346_v43, %v3452_v61  ;;  %v504_v22 = vsel %vm501_vm1, %v502_v57, %v503_v45  ;;  %v3481_v15 = vmul.f32 %v3346_v43, %v3465_v7 }
  0xa5   : > { %v3485_v30 = vmul.f32 %v3344_v42, %v3452_v61  ;;  %v3489_v40 = vmul.f32 %v3350_v46, %v3452_v61  ;;  %v3493_v45 = vmul.f32 %v3364_v58, %v3452_v61  ;;  %v894_v47 = vsel %vm501_vm1, %v892_v9, %v893_v10 }
  0xa6   : > { %v732_v41 = vadd.f32 %v662_v13, %v573_v6  ;;  %v572_v48 = vadd.f32 %v504_v22, %v413_v16  ;;  %v3502_v51 = vadd.f32 %v3359_v54, %v393_v17  ;;  %v3506_v53 = vmul.f32 %v3366_v59, %v3452_v61 }
  0xa7   : > { %v961_v55 = vadd.f32 %v894_v47, %v803_v12  ;;  %v663_v57 = vsel %vm660_vm2, %v661_v26, %v662_v13  ;;  %v962_v60 = vadd.f32 %v893_v10, %v804_v27  ;;  %v994_v6 = vmul.f32 %v3368_v62, %v3354_v52  ;;  %v3532_v24 = vpop.permute.xlu0 %293 }
  0xa8   : > { %v1050_v28 = vrot.slane %v993_v33, 2  ;;  %v1221_v9 = vmul.f32 %v3402_v23, %v3371_v1  ;;  %v1222_v16 = vmul.f32 %v3402_v23, %v3373_v2  ;;  %v1379_v17 = vmul.f32 %v3498_v25, %v3371_v1 }
  0xa9   : > { %v1051_v22 = vrot.slane %v994_v6, 2  ;;  %v1380_v12 = vmul.f32 %v3498_v25, %v3373_v2  ;;  %v418_v10 = vadd.f32 %v3359_v54, %v3410_v29  ;;  %v450_v13 = vmul.f32 %v3344_v42, %v3354_v52 }
  0xaa   : > { %v1278_v27 = vrot.slane %v1221_v9, 1  ;;  %v1279_v33 = vrot.slane %v1222_v16, 1  ;;  %v609_v47 = vmul.f32 %v3350_v46, %v3354_v52  ;;  %v1162_v6 = vmul.f32 %v3393_v18, %v3373_v2 }
  0xab   : > { %v1052_v31 = vsel %vm660_vm2, %v1050_v28, %v1051_v22  ;;  %v1120_v3 = vadd.f32 %v1051_v22, %v962_v60  ;;  %v509_v63 = vrot.slane %v450_v13, 1  ;;  %v1161_v29 = vmul.f32 %v3393_v18, %v3371_v1 }
  0xac   : > { %v1119_v34 = vadd.f32 %v1052_v31, %v961_v55  ;;  %v1436_v49 = vrot.slane %v1379_v17, 2  ;;  %v668_v5 = vrot.slane %v609_v47, 2  ;;  %v1437_v16 = vrot.slane %v1380_v12, 2 }
  0xad   : > { %v1190_v9 = vadd.f32 %v1162_v6, %v1120_v3  ;;  %v510_v26 = vsel %vm501_vm1, %v508_v20, %v509_v63  ;;  %v577_v28 = vadd.f32 %v509_v63, %v418_v10  ;;  %v1280_v22 = vsel %vm501_vm1, %v1278_v27, %v1279_v33  ;;  %v3548_v20 = vpop.permute.xlu1 %298 }
  0xae   : > { %v1189_v60 = vadd.f32 %v1161_v29, %v1119_v34  ;;  %v778_v31 = vmul.f32 %v3364_v58, %v3373_v2  ;;  %v838_v55 = vmul.f32 %v3366_v59, %v3373_v2  ;;  %v576_v13 = vadd.f32 %v510_v26, %v3396_v19 }
  0xaf   : > { %v1348_v17 = vadd.f32 %v1279_v33, %v1190_v9  ;;  %v736_v47 = vadd.f32 %v668_v5, %v577_v28  ;;  %v3545_v3 = vmul.f32 %v3368_v62, %v3373_v2  ;;  %v802_v8 = vadd.f32 %v3420_v35, %v732_v41 }
  0xb0   : > { %v395_v63 = vmul.f32 %v3346_v43, %v3532_v24  ;;  %v1347_v34 = vadd.f32 %v1280_v22, %v1189_v60  ;;  %v5610_v12 = vrot.slane %v3385_v11, 2  ;;  %v1438_v27 = vsel %vm660_vm2, %v1436_v49, %v1437_v16  ;;  %v3584_v22 = vpop.permute.xlu0 %303 }
  0xb1   : > { %v3556_v19 = vadd.f32 %v1437_v16, %v1348_v17  ;;  %v806_v26 = vadd.f32 %v778_v31, %v736_v47  ;;  %v896_v33 = vrot.slane %v838_v55, 1  ;;  %v731_v6 = vadd.f32 %v663_v57, %v572_v48 }
  0xb2   : > { %v669_v10 = vsel %vm660_vm2, %v5610_v12, %v668_v5  ;;  %v3560_v35 = vmul.f32 %v3344_v42, %v3532_v24  ;;  %v3562_v41 = vadd.f32 %v1438_v27, %v1347_v34  ;;  %v3566_v29 = vmul.f32 %v3402_v23, %v3465_v7 }
  0xb3   : > { %5611 = vst [vmem:[#allocation6_spill] sm:$0xff] %v3556_v19  ;;  %1775 = vrot.lane.b32.xlu1 %v3556_v19, %s3254_s6  ;;  %v735_v11 = vadd.f32 %v669_v10, %v576_v13  ;;  %v964_v49 = vadd.f32 %v896_v33, %v806_v26  ;;  %v1054_v5 = vrot.slane %v3545_v3, 2  ;;  %v1164_v48 = vmul.f32 %v3393_v18, %v3465_v7 }
  0xb4   : > { %5612 = vst [vmem:[#allocation7_spill] sm:$0xff] %v3562_v41  ;;  %v5613_v57 = vrot.slane %v3432_v39, 1  ;;  %v3578_v28 = vmul.f32 %v3350_v46, %v3532_v24  ;;  %v3582_v60 = vmul.f32 %v3366_v59, %v3532_v24  ;;  %v3588_v31 = vmul.f32 %v3346_v43, %v3548_v20 }
  0xb5   : > { %v1122_v55 = vadd.f32 %v1054_v5, %v964_v49  ;;  %v5497_v39 = vrot.slane %v3566_v29, 1  ;;  %v3593_v17 = vmul.f32 %v3498_v25, %v3465_v7  ;;  %v801_v13 = vadd.f32 %v3400_v21, %v731_v6 }
  0xb6   : > { %v960_v9 = vadd.f32 %v5613_v57, %v802_v8  ;;  %5614 = vst [vmem:[#allocation8_spill] sm:$0xff] %v3582_v60  ;;  %v3597_v47 = vadd.f32 %v3359_v54, %v395_v63  ;;  %v3601_v3 = vmul.f32 %v3364_v58, %v3532_v24  ;;  %v3603_v8 = vpop.permute.xlu1 %308  ;;  %v995_v34 = vmul.f32 %v3368_v62, %v3371_v1 }
  0xb7   : > { %v397_v10 = vmul.f32 %v3346_v43, %v3584_v22  ;;  %v805_v27 = vadd.f32 %v3444_v50, %v735_v11  ;;  %v1192_v21 = vadd.f32 %v1164_v48, %v1122_v55  ;;  %v5616_v63 = vrot.slane %v3415_v32, 2 }
  0xb8   : > { %5615 = vst [vmem:[#allocation9_spill] sm:$0xff] %v3601_v3  ;;  %v3619_v57 = vmul.f32 %v3344_v42, %v3584_v22  ;;  %v3623_v1 = vmul.f32 %v3350_v46, %v3584_v22  ;;  %v3627_v50 = vmul.f32 %v3366_v59, %v3584_v22  ;;  %v1440_v48 = vrot.slane %v3593_v17, 2 }
  0xb9   : > { %v3613_v26 = vadd.f32 %v5616_v63, %v960_v9  ;;  %v1350_v11 = vadd.f32 %v5497_v39, %v1192_v21  ;;  %v3633_v9 = vadd.f32 %v3477_v36, %v801_v13  ;;  %v3637_v55 = vmul.f32 %v3346_v43, %v3603_v8 }
  0xba   : > { %5618 = vst [vmem:[#allocation11_spill] sm:$0xff] %v3619_v57  ;;  %5619 = vst [vmem:[#allocation12_spill] sm:$0xff] %v3623_v1  ;;  %v5622_v63 = vrot.slane %v3458_v4, 1  ;;  %v1053_v6 = vrot.slane %v995_v34, 2  ;;  %v3643_v12 = vadd.f32 %v3359_v54, %v397_v10  ;;  %v3647_v21 = vmul.f32 %v3364_v58, %v3584_v22  ;;  %v3654_v39 = vpop.permute.xlu1 %318 }
  0xbb   : > { %5617 = vst [vmem:[#allocation10_spill] sm:$0xff] %v3613_v26  ;;  %5620 = vst [vmem:[#allocation13_spill] sm:$0xff] %v3633_v9  ;;  %v3649_v16 = vadd.f32 %v1440_v48, %v1350_v11  ;;  %v1223_v13 = vmul.f32 %v3402_v23, %v3452_v61  ;;  %v420_v4 = vadd.f32 %v3359_v54, %v3463_v0 }
  0xbc   : > { %5621 = vst [vmem:[#allocation14_spill] sm:$0xff] %v3637_v55  ;;  %v897_v49 = vsel %vm501_vm1, %v5622_v63, %v896_v33  ;;  %5623 = vst [vmem:[#allocation15_spill] sm:$0xff] %v3643_v12  ;;  %v452_v33 = vmul.f32 %v3344_v42, %v3373_v2  ;;  %v611_v0 = vmul.f32 %v3350_v46, %v3373_v2  ;;  %v3673_v63 = vpop.permute.xlu0 %313 }
  0xbd   : > { %v963_v17 = vadd.f32 %v897_v49, %v805_v27  ;;  %5624 = vst [vmem:[#allocation16_spill] sm:$0xff] %v3649_v16  ;;  %1951 = vrot.lane.b32.xlu0 %v3649_v16, %s3255_s7  ;;  %v1381_v27 = vmul.f32 %v3498_v25, %v3452_v61  ;;  %1779 = vrot.lane.b32.xlu1 %v3649_v16, %s3254_s6  ;;  %v1281_v2 = vrot.slane %v1223_v13, 1  ;;  %v5626_v13 = vrot.slane %v3429_v38, 2 }
  0xbe   : > { %v1055_v49 = vsel %vm660_vm2, %v1053_v6, %v1054_v5  ;;  %v1163_v11 = vmul.f32 %v3393_v18, %v3452_v61  ;;  %v512_v34 = vrot.slane %v452_v33, 1  ;;  %v840_v36 = vmul.f32 %v3366_v59, %v3465_v7 }
  0xbf   : > { %v1121_v10 = vadd.f32 %v1055_v49, %v963_v17  ;;  %v400_v41 = vmul.f32 %v3346_v43, %v3654_v39  ;;  %v460_v9 = vmul.f32 %v3344_v42, %v3654_v39  ;;  %v671_v44 = vrot.slane %v611_v0, 2 }
  0xc0   : > { %v5625_v5 = vrot.slane %v3425_v37, 1  ;;  %v579_v14 = vadd.f32 %v512_v34, %v420_v4  ;;  %v780_v33 = vmul.f32 %v3364_v58, %v3465_v7  ;;  %v1439_v32 = vrot.slane %v1381_v27, 2 }
  0xc1   : > { %v459_v17 = vmul.f32 %v3344_v42, %v3673_v63  ;;  %v899_v26 = vrot.slane %v840_v36, 1  ;;  %v3691_v52 = vmul.f32 %v3350_v46, %v3654_v39  ;;  %v672_v37 = vsel %vm660_vm2, %v5626_v13, %v671_v44 }
  0xc2   : > { %v513_v6 = vsel %vm501_vm1, %v5625_v5, %v512_v34  ;;  %v738_v0 = vadd.f32 %v671_v44, %v579_v14  ;;  %v998_v4 = vmul.f32 %v3368_v62, %v3465_v7  ;;  %v428_v34 = vadd.f32 %v3359_v54, %v400_v41  ;;  %v3706_v44 = vpop.permute.xlu1 %328 }
  0xc3   : > { %v578_v49 = vadd.f32 %v513_v6, %v3449_v56  ;;  %v524_v27 = vrot.slane %v460_v9, 1  ;;  %v997_v56 = vmul.f32 %v3368_v62, %v3452_v61  ;;  %v1191_v36 = vadd.f32 %v1163_v11, %v1121_v10  ;;  %5628 = vst [vmem:[#allocation17_spill] sm:$0xff] %v3706_v44 }
  0xc4   : > { %v5627_v6 = vrot.slane %v3566_v29, 1  ;;  %v399_v38 = vmul.f32 %v3346_v43, %v3673_v63  ;;  %v808_v13 = vadd.f32 %v780_v33, %v738_v0  ;;  %v1441_v14 = vsel %vm660_vm2, %v1439_v32, %v1440_v48 }
  0xc5   : > { %v737_v5 = vadd.f32 %v672_v37, %v578_v49  ;;  %v523_v1 = vrot.slane %v459_v17, 1  ;;  %v5629_v9 = vrot.slane %v3506_v53, 1  ;;  %v683_v10 = vrot.slane %v3691_v52, 2 }
  0xc6   : > { %v1283_v19 = vsel %vm501_vm1, %v1281_v2, %v5627_v6  ;;  %v966_v29 = vadd.f32 %v899_v26, %v808_v13  ;;  %v1057_v11 = vrot.slane %v998_v4, 2  ;;  %v1226_v2 = vmul.f32 %v3402_v23, %v3548_v20 }
  0xc7   : > { %v807_v41 = vadd.f32 %v3493_v45, %v737_v5  ;;  %v900_v61 = vsel %vm501_vm1, %v5629_v9, %v899_v26  ;;  %v587_v49 = vadd.f32 %v524_v27, %v428_v34  ;;  %v1056_v33 = vrot.slane %v997_v56, 2 }
  0xc8   : > { %v402_v37 = vmul.f32 %v3346_v43, %v3706_v44  ;;  %v3720_v32 = vmul.f32 %v3344_v42, %v3706_v44  ;;  %v1124_v45 = vadd.f32 %v1057_v11, %v966_v29  ;;  %v1166_v53 = vmul.f32 %v3393_v18, %v3548_v20 }
  0xc9   : > { %v1384_v52 = vmul.f32 %v3498_v25, %v3548_v20  ;;  %v965_v26 = vadd.f32 %v900_v61, %v807_v41  ;;  %v1349_v48 = vadd.f32 %v1283_v19, %v1191_v36  ;;  %v427_v17 = vadd.f32 %v3359_v54, %v399_v38  ;;  %v3745_v61 = vpop.permute.xlu0 %323 }
  0xca   : > { %v525_v0 = vsel %vm501_vm1, %v523_v1, %v524_v27  ;;  %v618_v4 = vmul.f32 %v3350_v46, %v3673_v63  ;;  %v1194_v34 = vadd.f32 %v1166_v53, %v1124_v45  ;;  %v1285_v5 = vrot.slane %v1226_v2, 1  ;;  %5631 = vst [vmem:[#allocation19_spill] sm:$0xff] %v3745_v61 }
  0xcb   : > { %v1225_v56 = vmul.f32 %v3402_v23, %v3532_v24  ;;  %v1383_v6 = vmul.f32 %v3498_v25, %v3532_v24  ;;  %v3736_v13 = vmul.f32 %v3364_v58, %v3673_v63  ;;  %v1058_v19 = vsel %vm660_vm2, %v1056_v33, %v1057_v11 }
  0xcc   : > { %v430_v36 = vadd.f32 %v3359_v54, %v402_v37  ;;  %v527_v1 = vrot.slane %v3720_v32, 1  ;;  %v1352_v27 = vadd.f32 %v1285_v5, %v1194_v34  ;;  %v1443_v38 = vrot.slane %v1384_v52, 2 }
  0xcd   : > { %5630 = vst [vmem:[#allocation18_spill] sm:$0xff] %v3736_v13  ;;  %v1123_v41 = vadd.f32 %v1058_v19, %v965_v26  ;;  %v3743_v9 = vmul.f32 %v3350_v46, %v3706_v44  ;;  %v746_v29 = vadd.f32 %v683_v10, %v587_v49  ;;  %v586_v2 = vadd.f32 %v525_v0, %v427_v17  ;;  %v339_v0 = vpop.permute.xlu1 %338  ;;  %v334_v55 = vpop.permute.xlu0 %333 }
  0xce   : > { %v682_v45 = vrot.slane %v618_v4, 2  ;;  %v3749_v53 = vmul.f32 %v3366_v59, %v3673_v63  ;;  %v3751_v11 = vadd.f32 %v1443_v38, %v1352_v27  ;;  %v1165_v33 = vmul.f32 %v3393_v18, %v3532_v24 }
  0xcf   : > { %v1284_v37 = vrot.slane %v1225_v56, 1  ;;  %v1442_v32 = vrot.slane %v1383_v6, 2  ;;  %v589_v52 = vadd.f32 %v527_v1, %v430_v36  ;;  %v788_v26 = vmul.f32 %v3364_v58, %v3706_v44 }
  0xd0   : > { %5632 = vst [vmem:[#allocation20_spill] sm:$0xff] %v3751_v11  ;;  %v848_v49 = vmul.f32 %v3366_v59, %v3706_v44  ;;  %v461_v17 = vmul.f32 %v3344_v42, %v3745_v61  ;;  %v3761_v4 = vadd.f32 %v1441_v14, %v1349_v48  ;;  %1955 = vrot.lane.b32.xlu0 %v3751_v11, %s3255_s7  ;;  %v686_v56 = vrot.slane %v3743_v9, 2 }
  0xd1   : > { %v1193_v34 = vadd.f32 %v1165_v33, %v1123_v41  ;;  %v1006_v6 = vmul.f32 %v3368_v62, %v3706_v44  ;;  %v816_v19 = vadd.f32 %v788_v26, %v746_v29  ;;  %v684_v36 = vsel %vm660_vm2, %v682_v45, %v683_v10 }
  0xd2   : > { %5633 = vst [vmem:[#allocation21_spill] sm:$0xff] %v3761_v4  ;;  %v401_v27 = vmul.f32 %v3346_v43, %v3745_v61  ;;  %v847_v13 = vmul.f32 %v3366_v59, %v3745_v61  ;;  %v1286_v14 = vsel %vm501_vm1, %v1284_v37, %v1285_v5  ;;  %v745_v48 = vadd.f32 %v684_v36, %v586_v2 }
  0xd3   : > { %v404_v12 = vmul.f32 %v3346_v43, %v339_v0  ;;  %v3776_v41 = vmul.f32 %v3344_v42, %v339_v0  ;;  %v1444_v9 = vsel %vm660_vm2, %v1442_v32, %v1443_v38  ;;  %v748_v33 = vadd.f32 %v686_v56, %v589_v52 }
  0xd4   : > { %v911_v29 = vrot.slane %v848_v49, 1  ;;  %v526_v26 = vrot.slane %v461_v17, 1  ;;  %v1351_v10 = vadd.f32 %v1286_v14, %v1193_v34  ;;  %v1069_v45 = vrot.slane %v1006_v6, 2 }
  0xd5   : > { %v620_v44 = vmul.f32 %v3350_v46, %v3745_v61  ;;  %v787_v57 = vmul.f32 %v3364_v58, %v3745_v61  ;;  %v429_v2 = vadd.f32 %v3359_v54, %v401_v27  ;;  %v910_v37 = vrot.slane %v847_v13, 1 }
  0xd6   : > { %v974_v5 = vadd.f32 %v911_v29, %v816_v19  ;;  %v1005_v36 = vmul.f32 %v3368_v62, %v3745_v61  ;;  %v432_v38 = vadd.f32 %v3359_v54, %v404_v12  ;;  %v530_v32 = vrot.slane %v3776_v41, 1 }
  0xd7   : > { %v815_v60 = vadd.f32 %v787_v57, %v745_v48  ;;  %v3789_v52 = vmul.f32 %v3350_v46, %v339_v0  ;;  %v528_v49 = vsel %vm501_vm1, %v526_v26, %v527_v1  ;;  %v790_v17 = vmul.f32 %v3364_v58, %v339_v0 }
  0xd8   : > { %v3794_v34 = vmul.f32 %v3366_v59, %v339_v0  ;;  %v3797_v13 = vmul.f32 %v3368_v62, %v339_v0  ;;  %v3800_v57 = vadd.f32 %v1444_v9, %v1351_v10  ;;  %v685_v12 = vrot.slane %v620_v44, 2 }
  0xd9   : > { %v3803_v19 = vrot.slane %v3649_v16, 2  ;;  %v1132_v27 = vadd.f32 %v1069_v45, %v974_v5  ;;  %v912_v14 = vsel %vm501_vm1, %v910_v37, %v911_v29  ;;  %v1068_v1 = vrot.slane %v1005_v36, 2 }
  0xda   : > { %5634 = vst [vmem:[#allocation22_spill] sm:$0xff] %v3800_v57  ;;  %v818_v48 = vadd.f32 %v790_v17, %v748_v33  ;;  %v588_v41 = vadd.f32 %v528_v49, %v429_v2  ;;  %v973_v26 = vadd.f32 %v912_v14, %v815_v60  ;;  %v591_v61 = vadd.f32 %v530_v32, %v432_v38  ;;  %v349_v49 = vpop.permute.xlu1 %348 }
  0xdb   : > { %5635 = vst [vmem:[#allocation23_spill] sm:$0xff] %v3803_v19  ;;  %v5514_v3 = vrot.slane %v3789_v52, 2  ;;  %v914_v6 = vrot.slane %v3794_v34, 1  ;;  %v5530_v9 = vrot.slane %v3797_v13, 2  ;;  %v1174_v44 = vmul.f32 %v3393_v18, %v339_v0 }
  0xdc   : > { %v3811_v10 = vmul.f32 %v3402_v23, %v339_v0  ;;  %v3814_v29 = vmul.f32 %v3498_v25, %v339_v0  ;;  %v687_v33 = vsel %vm660_vm2, %v685_v12, %v686_v56  ;;  %v1669_v60 = vrot.slane %v3761_v4, 2 }
  0xdd   : > { %v1672_v5 = vrot.slane %v3800_v57, 2  ;;  %v976_v2 = vadd.f32 %v914_v6, %v818_v48  ;;  %v1202_v37 = vadd.f32 %v1174_v44, %v1132_v27  ;;  %v463_v36 = vmul.f32 %v3344_v42, %v334_v55 }
  0xde   : > { %5636 = vst [vmem:[#allocation24_spill] sm:$0xff] %v3814_v29  ;;  %v3821_v38 = vrot.slane %v3751_v11, 2  ;;  %v750_v17 = vadd.f32 %v5514_v3, %v591_v61  ;;  %v747_v34 = vadd.f32 %v687_v33, %v588_v41  ;;  %v1070_v0 = vsel %vm660_vm2, %v1068_v1, %v1069_v45 }
  0xdf   : > { %v3828_v56 = vsel %vm660_vm2, %v1669_v60, %v3803_v19  ;;  %v5529_v12 = vrot.slane %v3811_v10, 1  ;;  %v403_v27 = vmul.f32 %v3346_v43, %v334_v55  ;;  %v622_v61 = vmul.f32 %v3350_v46, %v334_v55 }
  0xe0   : > { %5637 = vst [vmem:[#allocation25_spill] sm:$0xff] %v3821_v38  ;;  %5638 = vst [vmem:[#allocation26_spill] sm:$0xff] %v3828_v56  ;;  %v3834_v14 = vsel %vm660_vm2, %v1672_v5, %v3821_v38  ;;  %v2296_v48 = vcombine.high %v3828_v56, %v3828_v56  ;;  %v406_v1 = vmul.f32 %v3346_v43, %v349_v49  ;;  %v529_v33 = vrot.slane %v463_v36, 1 }
  0xe1   : > { %5639 = vst [vmem:[#allocation27_spill] sm:$0xff] %v3834_v14  ;;  %v2347_v45 = vcombine.low %v3803_v19, %v3834_v14  ;;  %v3843_v41 = vmul.f32 %v3344_v42, %v349_v49  ;;  %v849_v60 = vmul.f32 %v3366_v59, %v334_v55  ;;  %v1134_v3 = vadd.f32 %v5530_v9, %v976_v2 }
  0xe2   : > { %v2344_v5 = vcombine.low %v3828_v56, %v2296_v48  ;;  %v1360_v16 = vadd.f32 %v5529_v12, %v1202_v37  ;;  %v1131_v57 = vadd.f32 %v1070_v0, %v973_v26  ;;  %v789_v19 = vmul.f32 %v3364_v58, %v334_v55 }
  0xe3   : > { %v1007_v4 = vmul.f32 %v3368_v62, %v334_v55  ;;  %v792_v38 = vmul.f32 %v3364_v58, %v349_v49  ;;  %v3856_v36 = vmul.f32 %v3366_v59, %v349_v49  ;;  %v431_v44 = vadd.f32 %v3359_v54, %v403_v27 }
  0xe4   : > { %v2452_v11 = vpack.c.bf16 %v2347_v45, %v2344_v5  ;;  %v688_v48 = vrot.slane %v622_v61, 2  ;;  %v434_v56 = vadd.f32 %v3359_v54, %v406_v1  ;;  %v5534_v2 = vrot.slane %v3843_v41, 1 }
  0xe5   : > { %v531_v37 = vsel %vm501_vm1, %v529_v33, %v530_v32  ;;  %v913_v26 = vrot.slane %v849_v60, 1  ;;  %v1173_v0 = vmul.f32 %v3393_v18, %v334_v55  ;;  %v820_v45 = vadd.f32 %v792_v38, %v750_v17 }
  0xe6   : > { %3082 = vmatmul.mubr.msk.bf16.vlgmr.msra.gmra.mrb[0].mxu1 %vm2099_vm3, %v2452_v11  ;;  %v817_v5 = vadd.f32 %v789_v19, %v747_v34  ;;  %v3865_v12 = vmul.f32 %v3402_v23, %v334_v55  ;;  %v3868_v9 = vmul.f32 %v3498_v25, %v334_v55  ;;  %v3871_v27 = vmul.f32 %v3350_v46, %v349_v49 }
  0xe7   : > { %v5641_v61 = vmov 0.0   ;;  %v5642_v32 = vrot.slane %v3814_v29, 2  ;;  %v1071_v33 = vrot.slane %v1007_v4, 2  ;;  %v5533_v11 = vrot.slane %v3856_v36, 1 }
  0xe8   : > { %5640 = vst [vmem:[#allocation28_spill] sm:$0xff] %v3868_v9  ;;  %3085 = vmatprep.mubr.msk.bf16.mxu1 %vm3253_vm0, %v5641_v61  ;;  %v3881_v19 = vmul.f32 %v3368_v62, %v349_v49  ;;  %v590_v38 = vadd.f32 %v531_v37, %v431_v44  ;;  %v3883_v17 = vadd.f32 %v1173_v0, %v1131_v57  ;;  %v3900_v37 = vpop.permute.xlu0 %343 }
  0xe9   : > { %v3877_v1 = vadd.f32 %v5642_v32, %v1360_v16  ;;  %v593_v55 = vadd.f32 %v5534_v2, %v434_v56  ;;  %v3888_v34 = vmul.f32 %v3402_v23, %v349_v49  ;;  %v915_v60 = vsel %vm501_vm1, %v913_v26, %v914_v6 }
  0xea   : > { %v978_v16 = vadd.f32 %v5533_v11, %v820_v45  ;;  %v1176_v4 = vmul.f32 %v3393_v18, %v349_v49  ;;  %v3895_v32 = vmul.f32 %v3498_v25, %v349_v49  ;;  %v5532_v56 = vrot.slane %v3871_v27, 2 }
  0xeb   : > { %5643 = vst [vmem:[#allocation29_spill] sm:$0xff] %v3877_v1  ;;  %5644 = vst [vmem:[#allocation30_spill] sm:$0xff] %v3888_v34  ;;  %v975_v1 = vadd.f32 %v915_v60, %v817_v5  ;;  %v5535_v0 = vrot.slane %v3881_v19, 2  ;;  %v424_v26 = vadd.f32 %v3359_v54, %v3588_v31  ;;  %v456_v45 = vmul.f32 %v3344_v42, %v3548_v20 }
  0xec   : > { %5645 = vst [vmem:[#allocation31_spill] sm:$0xff] %v3895_v32  ;;  %v1204_v6 = vadd.f32 %v1176_v4, %v1134_v3  ;;  %v3909_v49 = vadd.f32 %v5532_v56, %v593_v55  ;;  %v5536_v5 = vrot.slane %v3888_v34, 1  ;;  %v5646_v60 = vrot.slane %v3789_v52, 2 }
  0xed   : > { %v615_v57 = vmul.f32 %v3350_v46, %v3548_v20  ;;  %v3919_v3 = vadd.f32 %v5535_v0, %v978_v16  ;;  %v405_v4 = vmul.f32 %v3346_v43, %v3900_v37  ;;  %v518_v55 = vrot.slane %v456_v45, 1 }
  0xee   : > { %v690_v44 = vsel %vm660_vm2, %v688_v48, %v5646_v60  ;;  %v5647_v11 = vrot.slane %v3797_v13, 2  ;;  %v465_v48 = vmul.f32 %v3344_v42, %v3900_v37  ;;  %v1362_v2 = vadd.f32 %v5536_v5, %v1204_v6  ;;  %v359_v5 = vpop.permute.xlu1 %358 }
  0xef   : > { %v749_v56 = vadd.f32 %v690_v44, %v590_v38  ;;  %v677_v60 = vrot.slane %v615_v57, 2  ;;  %v583_v16 = vadd.f32 %v518_v55, %v424_v26  ;;  %v844_v0 = vmul.f32 %v3366_v59, %v3603_v8 }
  0xf0   : > { %v1073_v52 = vsel %vm660_vm2, %v1071_v33, %v5647_v11  ;;  %v5648_v31 = vrot.slane %v3560_v35, 1  ;;  %v3938_v13 = vmul.f32 %v3350_v46, %v3900_v37  ;;  %v1002_v33 = vmul.f32 %v3368_v62, %v3603_v8 }
  0xf1   : > { %v1133_v38 = vadd.f32 %v1073_v52, %v975_v1  ;;  %v433_v57 = vadd.f32 %v3359_v54, %v405_v4  ;;  %v742_v44 = vadd.f32 %v677_v60, %v583_v16  ;;  %v784_v6 = vmul.f32 %v3364_v58, %v3603_v8 }
  0xf2   : > { %v519_v45 = vsel %vm501_vm1, %v5648_v31, %v518_v55  ;;  %v5649_v35 = vrot.slane %v3578_v28, 2  ;;  %v532_v1 = vrot.slane %v465_v48, 1  ;;  %v791_v31 = vmul.f32 %v3364_v58, %v3900_v37 }
  0xf3   : > { %v582_v11 = vadd.f32 %v519_v45, %v3597_v47  ;;  %v851_v55 = vmul.f32 %v3366_v59, %v3900_v37  ;;  %v3955_v47 = vmul.f32 %v3368_v62, %v3900_v37  ;;  %v812_v4 = vadd.f32 %v784_v6, %v742_v44 }
  0xf4   : > { %v678_v26 = vsel %vm660_vm2, %v5649_v35, %v677_v60  ;;  %v905_v16 = vrot.slane %v844_v0, 1  ;;  %v1230_v28 = vmul.f32 %v3402_v23, %v3654_v39  ;;  %v5650_v60 = vrot.slane %v3895_v32, 2 }
  0xf5   : > { %v741_v52 = vadd.f32 %v678_v26, %v582_v11  ;;  %v1063_v35 = vrot.slane %v1002_v33, 2  ;;  %v1001_v11 = vmul.f32 %v3368_v62, %v3584_v22  ;;  %v408_v9 = vmul.f32 %v3346_v43, %v359_v5 }
  0xf6   : > { %v3961_v48 = vadd.f32 %v5650_v60, %v1362_v2  ;;  %v970_v26 = vadd.f32 %v905_v16, %v812_v4  ;;  %v3969_v0 = vmul.f32 %v3344_v42, %v359_v5  ;;  %v5652_v44 = vrot.slane %v3843_v41, 1 }
  0xf7   : > { %v811_v34 = vadd.f32 %v3647_v21, %v741_v52  ;;  %v819_v2 = vadd.f32 %v791_v31, %v749_v56  ;;  %v916_v60 = vrot.slane %v851_v55, 1  ;;  %v1175_v33 = vmul.f32 %v3393_v18, %v3900_v37 }
  0xf8   : > { %5651 = vst [vmem:[#allocation32_spill] sm:$0xff] %v3961_v48  ;;  %v534_v6 = vsel %vm501_vm1, %v532_v1, %v5652_v44  ;;  %v1128_v45 = vadd.f32 %v1063_v35, %v970_v26  ;;  %v1170_v4 = vmul.f32 %v3393_v18, %v3654_v39  ;;  %v1291_v48 = vrot.slane %v1230_v28, 1 }
  0xf9   : > { %v1388_v21 = vmul.f32 %v3498_v25, %v3654_v39  ;;  %v5653_v52 = vrot.slane %v3627_v50, 1  ;;  %v1062_v41 = vrot.slane %v1001_v11, 2  ;;  %v1229_v56 = vmul.f32 %v3402_v23, %v3673_v63 }
  0xfa   : > { %v1387_v1 = vmul.f32 %v3498_v25, %v3673_v63  ;;  %v1198_v31 = vadd.f32 %v1170_v4, %v1128_v45  ;;  %v436_v26 = vadd.f32 %v3359_v54, %v408_v9  ;;  %v1074_v44 = vrot.slane %v3955_v47, 2 }
  0xfb   : > { %v906_v32 = vsel %vm501_vm1, %v5653_v52, %v905_v16  ;;  %v3990_v29 = vadd.f32 %v1175_v33, %v1133_v38  ;;  %v3994_v50 = vmul.f32 %v3402_v23, %v3900_v37  ;;  %v3998_v16 = vmul.f32 %v3498_v25, %v3900_v37 }
  0xfc   : > { %v969_v55 = vadd.f32 %v906_v32, %v811_v34  ;;  %v592_v11 = vadd.f32 %v534_v6, %v433_v57  ;;  %v1356_v52 = vadd.f32 %v1291_v48, %v1198_v31  ;;  %v1449_v45 = vrot.slane %v1388_v21, 2 }
  0xfd   : > { %v4001_v34 = vmul.f32 %v3350_v46, %v359_v5  ;;  %v1064_v9 = vsel %vm660_vm2, %v1062_v41, %v1063_v35  ;;  %v1290_v32 = vrot.slane %v1229_v56, 1  ;;  %v794_v38 = vmul.f32 %v3364_v58, %v359_v5 }
  0xfe   : > { %v4006_v47 = vmul.f32 %v3366_v59, %v359_v5  ;;  %v4008_v33 = vadd.f32 %v1449_v45, %v1356_v52  ;;  %v1127_v4 = vadd.f32 %v1064_v9, %v969_v55  ;;  %v1448_v28 = vrot.slane %v1387_v1, 2 }
  0xff   : > { %v5655_v37 = vrot.slane %v3969_v0, 1  ;;  %v5656_v6 = vrot.slane %v3856_v36, 1  ;;  %v822_v35 = vadd.f32 %v794_v38, %v3909_v49  ;;  %v4018_v41 = vmul.f32 %v3368_v62, %v359_v5 }
 0x100   : > { %5654 = vst [vmem:[#allocation33_spill] sm:$0xff] %v4008_v33  ;;  %1963 = vrot.lane.b32.xlu1 %v4008_v33, %s3255_s7  ;;  %v1169_v56 = vmul.f32 %v3393_v18, %v3673_v63  ;;  %v5543_v1 = vrot.slane %v4001_v34, 2  ;;  %v4026_v55 = vmul.f32 %v3402_v23, %v359_v5  ;;  %v4029_v36 = vmul.f32 %v3498_v25, %v359_v5 }
 0x101   : > { %v595_v57 = vadd.f32 %v5655_v37, %v436_v26  ;;  %v918_v21 = vsel %vm501_vm1, %v916_v60, %v5656_v6  ;;  %v1292_v26 = vsel %vm501_vm1, %v1290_v32, %v1291_v48  ;;  %v5544_v52 = vrot.slane %v4006_v47, 1 }
 0x102   : > { %5657 = vst [vmem:[#allocation34_spill] sm:$0xff] %v4026_v55  ;;  %5658 = vst [vmem:[#allocation35_spill] sm:$0xff] %v4029_v36  ;;  %v977_v60 = vadd.f32 %v918_v21, %v819_v2  ;;  %v1197_v9 = vadd.f32 %v1169_v56, %v1127_v4  ;;  %v4035_v38 = vsel %vm660_vm2, %v1448_v28, %v1449_v45  ;;  %v5542_v2 = vrot.slane %v4018_v41, 2 }
 0x103   : > { %v4039_v37 = vadd.f32 %v5543_v1, %v595_v57  ;;  %v1178_v6 = vmul.f32 %v3393_v18, %v359_v5  ;;  %v980_v31 = vadd.f32 %v5544_v52, %v822_v35  ;;  %v422_v48 = vadd.f32 %v3359_v54, %v3481_v15 }
 0x104   : > { %v454_v32 = vmul.f32 %v3344_v42, %v3465_v7  ;;  %v613_v5 = vmul.f32 %v3350_v46, %v3465_v7  ;;  %v5659_v57 = vrot.slane %v3871_v27, 2  ;;  %v5660_v21 = vrot.slane %v3938_v13, 2 }
 0x105   : > { %v4050_v28 = vadd.f32 %v1178_v6, %v3919_v3  ;;  %v5661_v54 = vrot.slane %v3881_v19, 2  ;;  %v842_v3 = vmul.f32 %v3366_v59, %v3548_v20  ;;  %v4066_v6 = vadd.f32 %v1292_v26, %v1197_v9 }
 0x106   : > { %v693_v35 = vsel %vm660_vm2, %v5660_v21, %v5659_v57  ;;  %v515_v56 = vrot.slane %v454_v32, 1  ;;  %v674_v4 = vrot.slane %v613_v5, 2  ;;  %v1000_v7 = vmul.f32 %v3368_v62, %v3548_v20  ;;  %v4088_v21 = vpop.permute.xlu0 %353 }
 0x107   : > { %v1076_v15 = vsel %vm660_vm2, %v1074_v44, %v5661_v54  ;;  %v999_v27 = vmul.f32 %v3368_v62, %v3532_v24  ;;  %v4074_v13 = vadd.f32 %v5542_v2, %v980_v31  ;;  %v4076_v19 = vadd.f32 %v693_v35, %v592_v11 }
 0x108   : > { %v581_v44 = vadd.f32 %v515_v56, %v422_v48  ;;  %v5662_v32 = vrot.slane %v3485_v30, 1  ;;  %v4081_v26 = vadd.f32 %v1076_v15, %v977_v60  ;;  %v782_v9 = vmul.f32 %v3364_v58, %v3548_v20 }
 0x109   : > { %v1228_v5 = vmul.f32 %v3402_v23, %v3603_v8  ;;  %v902_v11 = vrot.slane %v842_v3, 1  ;;  %v1386_v48 = vmul.f32 %v3498_v25, %v3603_v8  ;;  %v5663_v30 = vrot.slane %v3489_v40, 2  ;;  %v5664_v3 = vld [vmem:[#allocation14_spill] sm:$0xff] }
 0x10a   : > { %v516_v57 = vsel %vm501_vm1, %v5662_v32, %v515_v56  ;;  %v740_v31 = vadd.f32 %v674_v4, %v581_v44  ;;  %v1060_v35 = vrot.slane %v1000_v7, 2  ;;  %v1059_v15 = vrot.slane %v999_v27, 2  ;;  %v5665_v32 = vld [vmem:[#allocation9_spill] sm:$0xff] }
 0x10b   : > { %v580_v24 = vadd.f32 %v516_v57, %v3502_v51  ;;  %v675_v60 = vsel %vm660_vm2, %v5663_v30, %v674_v4  ;;  %v1227_v20 = vmul.f32 %v3402_v23, %v3584_v22  ;;  %v4100_v51 = vld [vmem:[%s5491_s2] ss:$0 sm:$0xff]  ;;  %v458_v40 = vmul.f32 %v3344_v42, %v3603_v8  ;;  %v5666_v30 = vld [vmem:[#allocation8_spill] sm:$0xff] }
 0x10c   : > { %v810_v56 = vadd.f32 %v782_v9, %v740_v31  ;;  %v426_v44 = vadd.f32 %v4100_v51, %v5664_v3  ;;  %v617_v4 = vmul.f32 %v3350_v46, %v3603_v8  ;;  %v4110_v7 = vmul.f32 %v3346_v43, %v4088_v21 }
 0x10d   : > { %v739_v54 = vadd.f32 %v675_v60, %v580_v24  ;;  %v1168_v27 = vmul.f32 %v3393_v18, %v3603_v8  ;;  %v1385_v9 = vmul.f32 %v3498_v25, %v3584_v22  ;;  %v1288_v31 = vrot.slane %v1228_v5, 1 }
 0x10e   : > { %v968_v24 = vadd.f32 %v902_v11, %v810_v56  ;;  %v5667_v60 = vrot.slane %v5666_v30, 1  ;;  %v521_v45 = vrot.slane %v458_v40, 1  ;;  %v1446_v49 = vrot.slane %v1386_v48, 2 }
 0x10f   : > { %v809_v57 = vadd.f32 %v5665_v32, %v739_v54  ;;  %v1287_v1 = vrot.slane %v1227_v20, 1  ;;  %v846_v52 = vmul.f32 %v3366_v59, %v3654_v39  ;;  %v1061_v8 = vsel %vm660_vm2, %v1059_v15, %v1060_v35 }
 0x110   : > { %v903_v3 = vsel %vm501_vm1, %v5667_v60, %v902_v11  ;;  %v1126_v36 = vadd.f32 %v1060_v35, %v968_v24  ;;  %v585_v54 = vadd.f32 %v521_v45, %v426_v44  ;;  %v680_v32 = vrot.slane %v617_v4, 2  ;;  %v5670_v44 = vld [vmem:[#allocation15_spill] sm:$0xff]  ;;  %v5671_v60 = vld [vmem:[#allocation12_spill] sm:$0xff] }
 0x111   : > { %v967_v2 = vadd.f32 %v903_v3, %v809_v57  ;;  %v1167_v5 = vmul.f32 %v3393_v18, %v3584_v22  ;;  %v1445_v56 = vrot.slane %v1385_v9, 2  ;;  %v786_v11 = vmul.f32 %v3364_v58, %v3654_v39  ;;  %v5668_v57 = vld [vmem:[#allocation11_spill] sm:$0xff] }
 0x112   : > { %v1196_v40 = vadd.f32 %v1168_v27, %v1126_v36  ;;  %v744_v48 = vadd.f32 %v680_v32, %v585_v54  ;;  %v1004_v20 = vmul.f32 %v3368_v62, %v3654_v39  ;;  %v5669_v30 = vrot.slane %v5668_v57, 1 }
 0x113   : > { %v1125_v55 = vadd.f32 %v1061_v8, %v967_v2  ;;  %v1289_v15 = vsel %vm501_vm1, %v1287_v1, %v1288_v31  ;;  %v908_v2 = vrot.slane %v846_v52, 1  ;;  %v5672_v3 = vrot.slane %v5671_v60, 2 }
 0x114   : > { %v522_v24 = vsel %vm501_vm1, %v5669_v30, %v521_v45  ;;  %v1354_v22 = vadd.f32 %v1288_v31, %v1196_v40  ;;  %v814_v9 = vadd.f32 %v786_v11, %v744_v48  ;;  %v1003_v27 = vmul.f32 %v3368_v62, %v3673_v63  ;;  %v5674_v31 = vld [vmem:[#allocation17_spill] sm:$0xff]  ;;  %v5676_v63 = vld [vmem:[#allocation18_spill] sm:$0xff] }
 0x115   : > { %v1195_v35 = vadd.f32 %v1167_v5, %v1125_v55  ;;  %v584_v4 = vadd.f32 %v522_v24, %v5670_v44  ;;  %v681_v36 = vsel %vm660_vm2, %v5672_v3, %v680_v32  ;;  %v467_v39 = vmul.f32 %v3344_v42, %v4088_v21  ;;  %v5679_v3 = vld [vmem:[#allocation19_spill] sm:$0xff] }
 0x116   : > { %v1447_v55 = vsel %vm660_vm2, %v1445_v56, %v1446_v49  ;;  %v4142_v1 = vadd.f32 %v1446_v49, %v1354_v22  ;;  %v972_v52 = vadd.f32 %v908_v2, %v814_v9  ;;  %v1066_v54 = vrot.slane %v1004_v20, 2 }
 0x117   : > { %v1353_v8 = vadd.f32 %v1289_v15, %v1195_v35  ;;  %v743_v45 = vadd.f32 %v681_v36, %v584_v4  ;;  %v1232_v5 = vmul.f32 %v3402_v23, %v5674_v31  ;;  %v1172_v32 = vmul.f32 %v3393_v18, %v5674_v31 }
 0x118   : > { %5673 = vst [vmem:[#allocation14_spill] sm:$0xff] %v4142_v1  ;;  %v1065_v48 = vrot.slane %v1003_v27, 2  ;;  %1787 = vrot.lane.b32.xlu1 %v4142_v1, %s3254_s6  ;;  %v1130_v56 = vadd.f32 %v1066_v54, %v972_v52  ;;  %v4155_v49 = vmul.f32 %v3498_v25, %v5674_v31  ;;  %v5677_v20 = vrot.slane %v3749_v53, 1 }
 0x119   : > { %v4146_v11 = vadd.f32 %v1447_v55, %v1353_v8  ;;  %v813_v40 = vadd.f32 %v5676_v63, %v743_v45  ;;  %v4161_v30 = vrot.slane %v4142_v1, 2  ;;  %v4165_v24 = vmul.f32 %v3350_v46, %v4088_v21 }
 0x11a   : > { %v909_v57 = vsel %vm501_vm1, %v5677_v20, %v908_v2  ;;  %v793_v35 = vmul.f32 %v3364_v58, %v4088_v21  ;;  %v853_v4 = vmul.f32 %v3366_v59, %v4088_v21  ;;  %v1200_v22 = vadd.f32 %v1172_v32, %v1130_v56  ;;  %v4194_v32 = vpop.permute.xlu1 %368 }
 0x11b   : > { %5675 = vst [vmem:[#allocation9_spill] sm:$0xff] %v4146_v11  ;;  %5678 = vst [vmem:[#allocation8_spill] sm:$0xff] %v4161_v30  ;;  %v971_v15 = vadd.f32 %v909_v57, %v813_v40  ;;  %v1675_v44 = vrot.slane %v4146_v11, 2  ;;  %v1294_v53 = vrot.slane %v1232_v5, 1  ;;  %v2300_v2 = vcombine.high %v3834_v14, %v3834_v14 }
 0x11c   : > { %v535_v9 = vrot.slane %v467_v39, 1  ;;  %v1067_v60 = vsel %vm660_vm2, %v1065_v48, %v1066_v54  ;;  %v1231_v36 = vmul.f32 %v3402_v23, %v5679_v3  ;;  %v1452_v55 = vrot.slane %v4155_v49, 2  ;;  %1959 = vrot.lane.b32.xlu1 %v4142_v1, %s3255_s7  ;;  %v5682_v48 = vld [vmem:[#allocation25_spill] sm:$0xff] }
 0x11d   : > { %v4179_v27 = vsel %vm660_vm2, %v1675_v44, %v4161_v30  ;;  %v1358_v8 = vadd.f32 %v1294_v53, %v1200_v22  ;;  %v1129_v45 = vadd.f32 %v1067_v60, %v971_v15  ;;  %v435_v39 = vadd.f32 %v4100_v51, %v4110_v7 }
 0x11e   : > { %5680 = vst [vmem:[#allocation11_spill] sm:$0xff] %v4179_v27  ;;  %v2304_v52 = vcombine.high %v4179_v27, %v4179_v27  ;;  %v1011_v54 = vmul.f32 %v3368_v62, %v4088_v21  ;;  %v1177_v31 = vmul.f32 %v3393_v18, %v4088_v21  ;;  %v1389_v5 = vmul.f32 %v3498_v25, %v5679_v3 }
 0x11f   : > { %v4196_v63 = vadd.f32 %v1452_v55, %v1358_v8  ;;  %v1171_v40 = vmul.f32 %v3393_v18, %v5679_v3  ;;  %v2350_v56 = vcombine.low %v2300_v2, %v5682_v48  ;;  %v5683_v49 = vrot.slane %v3969_v0, 1  ;;  %v5685_v8 = vld [vmem:[#allocation20_spill] sm:$0xff] }
 0x120   : > { %v2353_v7 = vcombine.low %v4179_v27, %v2304_v52  ;;  %v919_v57 = vrot.slane %v853_v4, 1  ;;  %v4207_v15 = vmul.f32 %v3402_v23, %v4088_v21  ;;  %v1293_v25 = vrot.slane %v1231_v36, 1  ;;  %1783 = vrot.lane.b32.xlu1 %v5685_v8, %s3254_s6 }
 0x121   : > { %5681 = vst [vmem:[#allocation15_spill] sm:$0xff] %v4196_v63  ;;  %v537_v20 = vsel %vm501_vm1, %v535_v9, %v5683_v49  ;;  %1967 = vrot.lane.b32.xlu0 %v4196_v63, %s3255_s7  ;;  %v1199_v44 = vadd.f32 %v1171_v40, %v1129_v45  ;;  %v796_v2 = vmul.f32 %v3364_v58, %v4194_v32  ;;  %v4225_v9 = vld [vmem:[%s5490_s1 + $0x8] ss:$0 sm:$0xff]  ;;  %v1451_v36 = vrot.slane %v1389_v5, 2  ;;  %v364_v49 = vpop.permute.xlu0 %363 }
 0x122   : > { %v2455_v22 = vpack.c.bf16 %v2353_v7, %v2350_v56  ;;  %v4215_v60 = vmul.f32 %v3366_v59, %v4194_v32  ;;  %v4219_v0 = vadd.f32 %v4035_v38, %v4066_v6  ;;  %v821_v4 = vadd.f32 %v793_v35, %v4076_v19 }
 0x123   : > { %v4229_v3 = vmul.f32 %v4225_v9, %v4088_v21  ;;  %v694_v45 = vrot.slane %v4165_v24, 2  ;;  %v1077_v52 = vrot.slane %v1011_v54, 2  ;;  %v4235_v38 = vadd.f32 %v1177_v31, %v4081_v26  ;;  %v5687_v54 = vld [vmem:[#allocation21_spill] sm:$0xff] }
 0x124   : > { %5684 = vst [vmem:[#allocation12_spill] sm:$0xff] %v4219_v0  ;;  %3086 = vmatmul.mubr.msk.bf16.gmra.mrb[4].mxu1 %vm2099_vm3, %v2455_v22  ;;  %v824_v6 = vadd.f32 %v796_v2, %v4039_v37  ;;  %v594_v19 = vadd.f32 %v537_v20, %v435_v39  ;;  %v1295_v35 = vsel %vm501_vm1, %v1293_v25, %v1294_v53  ;;  %v5686_v26 = vrot.slane %v4006_v47, 1  ;;  %v5688_v47 = vld [vmem:[#allocation22_spill] sm:$0xff] }
 0x125   : > { %v4242_v21 = vmul.f32 %v3368_v62, %v4194_v32  ;;  %v4246_v5 = vmul.f32 %v3402_v23, %v4194_v32  ;;  %3089 = vmatprep.mubr.msk.bf16.mxu1 %vm3253_vm0, %v5641_v61  ;;  %v1357_v39 = vadd.f32 %v1295_v35, %v1199_v44  ;;  %v923_v53 = vrot.slane %v4215_v60, 1  ;;  %1777 = vrot.lane.b32.xlu0 %v5687_v54, %s3254_s6 }
 0x126   : > { %v921_v24 = vsel %vm501_vm1, %v919_v57, %v5686_v26  ;;  %v1453_v56 = vsel %vm660_vm2, %v1451_v36, %v1452_v55  ;;  %v1180_v7 = vmul.f32 %v3393_v18, %v4194_v32  ;;  %1953 = vrot.lane.b32.xlu1 %v5688_v47, %s3255_s7  ;;  %v410_v20 = vmul.f32 %v3346_v43, %v4194_v32 }
 0x127   : > { %v979_v31 = vadd.f32 %v921_v24, %v821_v4  ;;  %v470_v57 = vmul.f32 %v3344_v42, %v4194_v32  ;;  %v982_v25 = vadd.f32 %v923_v53, %v824_v6  ;;  %v4269_v44 = vmul.f32 %v4225_v9, %v4194_v32 }
 0x128   : > { %v1081_v55 = vrot.slane %v4242_v21, 2  ;;  %v4273_v22 = vadd.f32 %v1180_v7, %v4074_v13  ;;  %v5689_v60 = vrot.slane %v4001_v34, 2  ;;  %v4279_v36 = vadd.f32 %v1453_v56, %v1357_v39 }
 0x129   : > { %v5691_v35 = vrot.slane %v4018_v41, 2  ;;  %v409_v26 = vmul.f32 %v3346_v43, %v364_v49  ;;  %v469_v24 = vmul.f32 %v3344_v42, %v364_v49  ;;  %1785 = vrot.lane.b32.xlu0 %v4146_v11, %s3254_s6  ;;  %v855_v21 = vmul.f32 %v3366_v59, %v364_v49 }
 0x12a   : > { %v696_v4 = vsel %vm660_vm2, %v694_v45, %v5689_v60  ;;  %5690 = vst [vmem:[#allocation17_spill] sm:$0xff] %v4279_v36  ;;  %v1678_v34 = vrot.slane %v4219_v0, 2  ;;  %v4291_v45 = vrot.slane %v4008_v33, 2  ;;  %1961 = vrot.lane.b32.xlu1 %v4219_v0, %s3255_s7  ;;  %v1140_v41 = vadd.f32 %v1081_v55, %v982_v25 }
 0x12b   : > { %v1079_v6 = vsel %vm660_vm2, %v1077_v52, %v5691_v35  ;;  %v753_v13 = vadd.f32 %v696_v4, %v594_v19  ;;  %v438_v39 = vadd.f32 %v4100_v51, %v410_v20  ;;  %v539_v56 = vrot.slane %v470_v57, 1  ;;  %v4298_v19 = vpop.permute.xlu1 %378 }
 0x12c   : > { %5692 = vst [vmem:[#allocation18_spill] sm:$0xff] %v4291_v45  ;;  %v1137_v7 = vadd.f32 %v1079_v6, %v979_v31  ;;  %v795_v60 = vmul.f32 %v3364_v58, %v364_v49  ;;  %v4302_v4 = vsel %vm660_vm2, %v1678_v34, %v4291_v45  ;;  %v629_v35 = vmul.f32 %v3350_v46, %v4194_v32 }
 0x12d   : > { %5693 = vst [vmem:[#allocation19_spill] sm:$0xff] %v4302_v4  ;;  %v538_v2 = vrot.slane %v469_v24, 1  ;;  %v628_v25 = vmul.f32 %v3350_v46, %v364_v49  ;;  %v1013_v52 = vmul.f32 %v3368_v62, %v364_v49  ;;  %v2308_v20 = vcombine.high %v4302_v4, %v4302_v4 }
 0x12e   : > { %v823_v31 = vadd.f32 %v795_v60, %v753_v13  ;;  %v922_v57 = vrot.slane %v855_v21, 1  ;;  %v597_v6 = vadd.f32 %v539_v56, %v438_v39  ;;  %v698_v40 = vrot.slane %v629_v35, 2  ;;  %v4326_v21 = vpop.permute.xlu0 %373 }
 0x12f   : > { %v1182_v37 = vmul.f32 %v3393_v18, %v4298_v19  ;;  %v4314_v34 = vmul.f32 %v3402_v23, %v4298_v19  ;;  %v2356_v32 = vcombine.low %v4161_v30, %v4302_v4  ;;  %v2359_v24 = vcombine.low %v2308_v20, %v4291_v45 }
 0x130   : > { %v1179_v27 = vmul.f32 %v3393_v18, %v364_v49  ;;  %v4321_v0 = vmul.f32 %v3402_v23, %v364_v49  ;;  %v4324_v13 = vmul.f32 %v4225_v9, %v364_v49  ;;  %v756_v39 = vadd.f32 %v698_v40, %v597_v6 }
 0x131   : > { %v1080_v60 = vrot.slane %v1013_v52, 2  ;;  %v1210_v35 = vadd.f32 %v1182_v37, %v1140_v41  ;;  %v4330_v14 = vmul.f32 %v4225_v9, %v4298_v19  ;;  %v2458_v4 = vpack.c.bf16 %v2359_v24, %v2356_v32 }
 0x132   : > { %v924_v20 = vsel %vm501_vm1, %v922_v57, %v923_v53  ;;  %v798_v11 = vmul.f32 %v3364_v58, %v4298_v19  ;;  %v4337_v47 = vmul.f32 %v3366_v59, %v4298_v19  ;;  %v437_v49 = vadd.f32 %v4100_v51, %v409_v26 }
 0x133   : > { %v981_v54 = vadd.f32 %v924_v20, %v823_v31  ;;  %v5559_v52 = vrot.slane %v4314_v34, 1  ;;  %v4343_v37 = vmul.f32 %v3402_v23, %v4326_v21  ;;  %3090 = vmatmul.mubr.msk.bf16.gmra.mrb[8].mxu1 %vm2099_vm3, %v2458_v4  ;;  %v540_v53 = vsel %vm501_vm1, %v538_v2, %v539_v56  ;;  %v4360_v56 = vpop.permute.xlu1 %766 }
 0x134   : > { %v697_v41 = vrot.slane %v628_v25, 2  ;;  %v4347_v57 = vadd.f32 %v1179_v27, %v1137_v7  ;;  %v4351_v6 = vmul.f32 %v4225_v9, %v4326_v21  ;;  %v826_v32 = vadd.f32 %v798_v11, %v756_v39  ;;  %3093 = vmatprep.mubr.msk.bf16.mxu1 %vm3253_vm0, %v5641_v61  ;;  %v5695_v25 = vld [vmem:[#allocation6_spill] sm:$0xff] }
 0x135   : > { %v1368_v4 = vadd.f32 %v5559_v52, %v1210_v35  ;;  %v1082_v2 = vsel %vm660_vm2, %v1080_v60, %v1081_v55  ;;  %v926_v27 = vrot.slane %v4337_v47, 1  ;;  %v1016_v7 = vmul.f32 %v3368_v62, %v4298_v19  ;;  %v762_v55 = vpop.permute.xlu0 %761 }
 0x136   : > { %5694 = vst [vmem:[#allocation36_spill] sm:$0xff] %v4351_v6  ;;  %v596_v11 = vadd.f32 %v540_v53, %v437_v49  ;;  %v4366_v24 = vrot.slane %v5695_v25, 2  ;;  %v5568_v39 = vrot.slane %v4330_v14, 2  ;;  %v1139_v20 = vadd.f32 %v1082_v2, %v981_v54 }
 0x137   : > { %v1181_v31 = vmul.f32 %v3393_v18, %v4326_v21  ;;  %v984_v52 = vadd.f32 %v926_v27, %v826_v32  ;;  %v1244_v47 = vmul.f32 %v3402_v23, %v4360_v56  ;;  %v699_v49 = vsel %vm660_vm2, %v697_v41, %v698_v40 }
 0x138   : > { %1877 = vrot.lane.b32.xlu0 %v4366_v24, %s3256_s12  ;;  %v857_v54 = vmul.f32 %v3366_v59, %v4326_v21  ;;  %v1015_v53 = vmul.f32 %v3368_v62, %v4326_v21  ;;  %v412_v2 = vmul.f32 %v3346_v43, %v4298_v19  ;;  %v472_v32 = vmul.f32 %v3344_v42, %v4298_v19 }
 0x139   : > { %v4388_v60 = vadd.f32 %v5568_v39, %v1368_v4  ;;  %v1084_v40 = vrot.slane %v1016_v7, 2  ;;  %v755_v41 = vadd.f32 %v699_v49, %v596_v11  ;;  %v1243_v35 = vmul.f32 %v3402_v23, %v762_v55 }
 0x13a   : > { %v4391_v26 = vadd.f32 %v1181_v31, %v1139_v20  ;;  %v800_v45 = vmul.f32 %v3364_v58, %v4360_v56  ;;  %v1184_v1 = vmul.f32 %v3393_v18, %v4360_v56  ;;  %v4399_v33 = vmul.f32 %v4225_v9, %v4360_v56 }
 0x13b   : > { %5696 = vst [vmem:[#allocation6_spill] sm:$0xff] %v4388_v60  ;;  %v1142_v48 = vadd.f32 %v1084_v40, %v984_v52  ;;  %v1312_v30 = vrot.slane %v1244_v47, 1  ;;  %v797_v4 = vmul.f32 %v3364_v58, %v4326_v21  ;;  %v4404_v7 = vmul.f32 %v3366_v59, %v762_v55 }
 0x13c   : > { %5697 = vst [vmem:[#allocation37_spill] sm:$0xff] %v4399_v33  ;;  %v925_v31 = vrot.slane %v857_v54, 1  ;;  %v1083_v11 = vrot.slane %v1015_v53, 2  ;;  %v440_v20 = vadd.f32 %v4100_v51, %v412_v2  ;;  %v542_v49 = vrot.slane %v472_v32, 1 }
 0x13d   : > { %v825_v39 = vadd.f32 %v797_v4, %v755_v41  ;;  %v1311_v60 = vrot.slane %v1243_v35, 1  ;;  %v4408_v8 = vmul.f32 %v4225_v9, %v762_v55  ;;  %v471_v52 = vmul.f32 %v3344_v42, %v4326_v21 }
 0x13e   : > { %v4414_v6 = vmul.f32 %v3364_v58, %v762_v55  ;;  %v631_v54 = vmul.f32 %v3350_v46, %v4298_v19  ;;  %v411_v53 = vmul.f32 %v3346_v43, %v4326_v21  ;;  %v1212_v2 = vadd.f32 %v1184_v1, %v1142_v48 }
 0x13f   : > { %v4421_v35 = vmul.f32 %v3368_v62, %v762_v55  ;;  %v1183_v32 = vmul.f32 %v3393_v18, %v762_v55  ;;  %v541_v41 = vrot.slane %v471_v52, 1  ;;  %v927_v42 = vsel %vm501_vm1, %v925_v31, %v926_v27  ;;  %v5698_v31 = vld [vmem:[#allocation3_spill] sm:$0xff] }
 0x140   : > { %v928_v4 = vrot.slane %v4404_v7, 1  ;;  %v599_v47 = vadd.f32 %v542_v49, %v440_v20  ;;  %v630_v58 = vmul.f32 %v3350_v46, %v4326_v21  ;;  %v983_v33 = vadd.f32 %v927_v42, %v825_v39 }
 0x141   : > { %v1085_v19 = vsel %vm660_vm2, %v1083_v11, %v1084_v40  ;;  %v4430_v43 = vsel %vm501_vm1, %v1311_v60, %v1312_v30  ;;  %v1469_v1 = vrot.slane %v4408_v8, 2  ;;  %v701_v48 = vrot.slane %v631_v54, 2 }
 0x142   : > { %v860_v55 = vmul.f32 %v3366_v59, %v4360_v56  ;;  %v439_v27 = vadd.f32 %v4100_v51, %v411_v53  ;;  %v1160_v7 = vmul.f32 %v3393_v18, %v5698_v31  ;;  %v4438_v20 = vadd.f32 %v1312_v30, %v1212_v2  ;;  %v5699_v59 = vld [vmem:[#allocation10_spill] sm:$0xff] }
 0x143   : > { %v543_v46 = vsel %vm501_vm1, %v541_v41, %v542_v49  ;;  %v4443_v21 = vmul.f32 %v3402_v23, %v5698_v31  ;;  %v4447_v39 = vmul.f32 %v4225_v9, %v5698_v31  ;;  %v758_v60 = vadd.f32 %v701_v48, %v599_v47  ;;  %v5702_v47 = vld [vmem:[#allocation24_spill] sm:$0xff] }
 0x144   : > { %v700_v40 = vrot.slane %v630_v58, 2  ;;  %v1188_v11 = vadd.f32 %v1160_v7, %v5699_v59  ;;  %v5700_v51 = vrot.slane %v3811_v10, 1  ;;  %v5701_v52 = vrot.slane %v3865_v12, 1  ;;  %v5704_v58 = vld [vmem:[#allocation28_spill] sm:$0xff] }
 0x145   : > { %v1141_v54 = vadd.f32 %v1085_v19, %v983_v33  ;;  %v4457_v49 = vmul.f32 %v3368_v62, %v4360_v56  ;;  %v1276_v53 = vrot.slane %v4443_v21, 1  ;;  %v598_v41 = vadd.f32 %v543_v46, %v439_v27 }
 0x146   : > { %v1298_v30 = vsel %vm501_vm1, %v5701_v52, %v5700_v51  ;;  %v5703_v42 = vrot.slane %v5702_v47, 2  ;;  %v5705_v31 = vrot.slane %v5704_v58, 2  ;;  %v1681_v12 = vrot.slane %v4279_v36, 2 }
 0x147   : > { %v1359_v2 = vadd.f32 %v1298_v30, %v3883_v17  ;;  %v4468_v7 = vrot.slane %v4196_v63, 2  ;;  %v1346_v62 = vadd.f32 %v1276_v53, %v1188_v11  ;;  %v5575_v33 = vrot.slane %v4447_v39, 2  ;;  %v5707_v17 = vld [vmem:[#allocation29_spill] sm:$0xff] }
 0x148   : > { %v1456_v10 = vsel %vm660_vm2, %v5705_v31, %v5703_v42  ;;  %v4476_v19 = vrot.slane %v5707_v17, 2  ;;  %v828_v27 = vadd.f32 %v800_v45, %v758_v60  ;;  %v929_v46 = vrot.slane %v860_v55, 1  ;;  %v5708_v45 = vld [vmem:[#allocation30_spill] sm:$0xff] }
 0x149   : > { %v4473_v56 = vadd.f32 %v1456_v10, %v1359_v2  ;;  %v702_v59 = vsel %vm660_vm2, %v700_v40, %v701_v48  ;;  %v4481_v51 = vsel %vm660_vm2, %v1681_v12, %v4468_v7  ;;  %v4485_v52 = vadd.f32 %v5575_v33, %v1346_v62  ;;  %v5711_v10 = vld [vmem:[#allocation16_spill] sm:$0xff]  ;;  %v5712_v62 = vld [vmem:[#allocation31_spill] sm:$0xff] }
 0x14a   : > { %v2312_v30 = vcombine.high %v4481_v51, %v4481_v51  ;;  %v5709_v55 = vrot.slane %v5708_v45, 1  ;;  %v5710_v48 = vrot.slane %v3994_v50, 1  ;;  %v1211_v40 = vadd.f32 %v1183_v32, %v1141_v54 }
 0x14b   : > { %5706 = vst [vmem:[#allocation3_spill] sm:$0xff] %v4473_v56  ;;  %v1684_v11 = vrot.slane %v4473_v56, 2  ;;  %1969 = vrot.lane.b32.xlu1 %v4473_v56, %s3255_s7  ;;  %v1087_v2 = vrot.slane %v4457_v49, 2  ;;  %v757_v47 = vadd.f32 %v702_v59, %v598_v41  ;;  %v5573_v58 = vrot.slane %v4485_v52, 1  ;;  %v5716_v41 = vld [vmem:[#allocation32_spill] sm:$0xff] }
 0x14c   : > { %v1301_v60 = vsel %vm501_vm1, %v5710_v48, %v5709_v55  ;;  %v4505_v12 = vrot.slane %v5711_v10, 1  ;;  %v5713_v45 = vrot.slane %v5712_v62, 2  ;;  %v5714_v50 = vrot.slane %v3998_v16, 2  ;;  %v5717_v16 = vld [vmem:[#allocation34_spill] sm:$0xff] }
 0x14d   : > { %v1361_v42 = vadd.f32 %v1301_v60, %v3990_v29  ;;  %v4502_v31 = vsel %vm660_vm2, %v1684_v11, %v4476_v19  ;;  %v2362_v54 = vcombine.low %v4481_v51, %v2312_v30  ;;  %v4518_v59 = vrot.slane %v5716_v41, 2  ;;  %1593 = vrot.lane.b32.xlu0 %v5573_v58, %s3256_s12 }
 0x14e   : > { %v1459_v32 = vsel %vm660_vm2, %v5714_v50, %v5713_v45  ;;  %v2365_v29 = vcombine.low %v4468_v7, %v4502_v31  ;;  %v986_v11 = vadd.f32 %v929_v46, %v828_v27  ;;  %v930_v55 = vsel %vm501_vm1, %v928_v4, %v929_v46  ;;  %v1153_v45 = vpop.permute.xlu1 %1152 }
 0x14f   : > { %v4515_v49 = vadd.f32 %v1459_v32, %v1361_v42  ;;  %v1086_v48 = vrot.slane %v4421_v35, 2  ;;  %2026 = vrot.lane.b32.xlu1 %v4505_v12, %s3254_s6  ;;  %v5718_v30 = vrot.slane %v5717_v16, 1  ;;  %v827_v42 = vadd.f32 %v4414_v6, %v757_v47 }
 0x150   : > { %v2461_v62 = vpack.c.bf16 %v2365_v29, %v2362_v54  ;;  %v5720_v35 = vrot.slane %v4207_v15, 1  ;;  %v5574_v50 = vrot.slane %v4485_v52, 2  ;;  %v2316_v32 = vcombine.high %v4502_v31, %v4502_v31 }
 0x151   : > { %5715 = vst [vmem:[#allocation10_spill] sm:$0xff] %v4515_v49  ;;  %v1364_v60 = vadd.f32 %v5718_v30, %v4050_v28  ;;  %v1687_v27 = vrot.slane %v4515_v49, 2  ;;  %v5719_v4 = vmov %v5718_v30  ;;  %v5721_v28 = vld [vmem:[#allocation35_spill] sm:$0xff]  ;;  %v4551_v15 = vrot.slane %v5695_v25, 1 }
 0x152   : > { %v1304_v46 = vsel %vm501_vm1, %v5720_v35, %v5719_v4  ;;  %v5722_v30 = vrot.slane %v5721_v28, 2  ;;  %3094 = vmatmul.mubr.msk.bf16.gmra.mrb[12].mxu1 %vm2099_vm3, %v2461_v62  ;;  %v5725_v29 = vrot.slane %v4229_v3, 2  ;;  %v1148_v62 = vpop.permute.xlu0 %1147  ;;  %1701 = vrot.lane.b32.xlu0 %v5574_v50, %s3255_s7  ;;  %v985_v28 = vadd.f32 %v930_v55, %v827_v42 }
 0x153   : > { %v1363_v58 = vadd.f32 %v1304_v46, %v4235_v38  ;;  %v4548_v47 = vsel %vm660_vm2, %v1687_v27, %v4518_v59  ;;  %v5726_v38 = vrot.slane %v4246_v5, 1  ;;  %3097 = vmatprep.mubr.msk.bf16.mxu1 %vm3253_vm0, %v5641_v61  ;;  %v1246_v46 = vmul.f32 %v3402_v23, %v1153_v45  ;;  %1597 = vrot.lane.b32.xlu1 %v4551_v15, %s3256_s12 }
 0x154   : > { %v4543_v6 = vadd.f32 %v5722_v30, %v1364_v60  ;;  %v5724_v54 = vmov %v5722_v30  ;;  %v5727_v60 = vrot.slane %v4321_v0, 1  ;;  %v2320_v27 = vcombine.high %v4548_v47, %v4548_v47 }
 0x155   : > { %v1462_v16 = vsel %vm660_vm2, %v5725_v29, %v5724_v54  ;;  %v5728_v30 = vrot.slane %v4314_v34, 1  ;;  %v5729_v54 = vrot.slane %v4343_v37, 1  ;;  %v1088_v42 = vsel %vm660_vm2, %v1086_v48, %v1087_v2 }
 0x156   : > { %5723 = vst [vmem:[#allocation24_spill] sm:$0xff] %v4543_v6  ;;  %v1307_v4 = vsel %vm501_vm1, %v5727_v60, %v5726_v38  ;;  %v4570_v3 = vadd.f32 %v1462_v16, %v1363_v58  ;;  %v4573_v35 = vrot.slane %v4543_v6, 2  ;;  %v5730_v58 = vmov %v5726_v38 }
 0x157   : > { %v1365_v0 = vadd.f32 %v1307_v4, %v4347_v57  ;;  %v1310_v29 = vsel %vm501_vm1, %v5729_v54, %v5728_v30  ;;  %v1366_v16 = vadd.f32 %v5730_v58, %v4273_v22  ;;  %v1369_v38 = vadd.f32 %v4430_v43, %v1211_v40  ;;  %v5733_v43 = vld [vmem:[#allocation23_spill] sm:$0xff]  ;;  %1705 = vrot.lane.b32.xlu1 %v4366_v24, %s3255_s7  ;;  %v5738_v58 = vld [vmem:[#allocation37_spill] sm:$0xff] }
 0x158   : > { %v2371_v57 = vcombine.low %v4548_v47, %v2320_v27  ;;  %v1690_v60 = vrot.slane %v4570_v3, 2  ;;  %v1367_v55 = vadd.f32 %v1310_v29, %v4391_v26  ;;  %v1245_v34 = vmul.f32 %v3402_v23, %v1148_v62  ;;  %1881 = vrot.lane.b32.xlu0 %v5733_v43, %s3256_s12 }
 0x159   : > { %v2368_v37 = vcombine.low %v2316_v32, %v4476_v19  ;;  %v5731_v4 = vrot.slane %v4269_v44, 2  ;;  %v5732_v30 = vrot.slane %v4324_v13, 2  ;;  %v1144_v22 = vadd.f32 %v1087_v2, %v986_v11  ;;  %v3225_v13 = vld [vmem:[%s5492_s3 + $0x40] sm:$0xff]  }
 0x15a   : > { %v4603_v40 = vsel %vm660_vm2, %v1690_v60, %v4573_v35  ;;  %v1143_v32 = vadd.f32 %v1088_v42, %v985_v28  ;;  %v5735_v11 = vrot.slane %v4330_v14, 2  ;;  %v1186_v28 = vmul.f32 %v3393_v18, %v1153_v45  ;;  %2996 = vmatprep.subr.bf16.mxu0 %v3225_v13 }
 0x15b   : > { %v1465_v5 = vsel %vm660_vm2, %v5732_v30, %v5731_v4  ;;  %v5734_v48 = vmov %v5731_v4  ;;  %v2464_v54 = vpack.c.bf16 %v2371_v57, %v2368_v37  ;;  %v2324_v2 = vcombine.high %v4603_v40, %v4603_v40  ;;  %v5740_v57 = vld [vmem:[#allocation20_spill] sm:$0xff] }
 0x15c   : > { %v4605_v26 = vadd.f32 %v1465_v5, %v1365_v0  ;;  %v4609_v27 = vadd.f32 %v5734_v48, %v1366_v16  ;;  %v5736_v0 = vld [vmem:[#allocation36_spill] sm:$0xff]  ;;  %v5739_v16 = vrot.slane %v5738_v58, 2  ;;  %v4630_v42 = vrot.slane %v5740_v57, 1 }
 0x15d   : > { %v5737_v29 = vrot.slane %v5736_v0, 2  ;;  %v1315_v4 = vrot.slane %v1246_v46, 1  ;;  %v1404_v14 = vmul.f32 %v4225_v9, %v1153_v45  ;;  %v1185_v30 = vmul.f32 %v3393_v18, %v1148_v62  ;;  %3098 = vmatmul.mubr.msk.bf16.gmra.mrb[16].mxu1 %vm2099_vm3, %v2464_v54  ;;  %v3226_v45 = vld [vmem:[%s5492_s3] sm:$0xff]  }
 0x15e   : > { %v1471_v60 = vsel %vm660_vm2, %v1469_v1, %v5739_v16  ;;  %v1403_v5 = vmul.f32 %v4225_v9, %v1148_v62  ;;  %v1214_v8 = vadd.f32 %v1186_v28, %v1144_v22  ;;  %v1314_v48 = vrot.slane %v1245_v34, 1  ;;  %2030 = vrot.lane.b32.xlu0 %v4630_v42, %s3254_s6  ;;  %3101 = vmatprep.mubr.msk.bf16.mxu1 %vm3253_vm0, %v5641_v61  ;;  %v3227_v62 = vld [vmem:[%s5492_s3 + $0x48] sm:$0xff]   ;;  %v5743_v22 = vld [vmem:[#allocation4_spill] sm:$0xff] }
 0x15f   : > { %v1468_v44 = vsel %vm660_vm2, %v5737_v29, %v5735_v11  ;;  %v1693_v1 = vrot.slane %v4605_v26, 2  ;;  %v4644_v46 = vrot.slane %v4609_v27, 2  ;;  %v5744_v13 = vrot.slane %v5743_v22, 2  ;;  %v5748_v22 = vld [vmem:[#allocation2_spill] sm:$0xff]  ;;  %2997 = vmatpush3.bf16.msra.mxu0 %v3226_v45 }
 0x160   : > { %v4632_v37 = vadd.f32 %v1468_v44, %v1367_v55  ;;  %v5741_v55 = vld [vmem:[#allocation5_spill] sm:$0xff]  ;;  %v4657_v11 = vadd.f32 %v1471_v60, %v1369_v38  ;;  %v1213_v0 = vadd.f32 %v1185_v30, %v1143_v32  ;;  %v2377_v29 = vcombine.low %v2324_v2, %v4573_v35  ;;  %v5745_v44 = vld [vmem:[#allocation8_spill] sm:$0xff]  ;;  %2998 = vmatprep.subr.bf16.mxu0 %v3227_v62 }
 0x161   : > { %v5742_v34 = vrot.slane %v5741_v55, 2  ;;  %1889 = vrot.lane.b32.xlu1 %v5745_v44, %s3256_s12  ;;  %v4665_v28 = vadd.f32 %v5739_v16, %v4438_v20  ;;  %v5746_v55 = vld [vmem:[#allocation6_spill] sm:$0xff]  ;;  %v1219_v38 = vmul.f32 %v3402_v23, %v5748_v22  ;;  %v5749_v32 = vld [vmem:[#allocation13_spill] sm:$0xff]  ;;  %v1473_v2 = vrot.slane %v1404_v14, 2  ;;  %v3228_v20 = vld [vmem:[%s5492_s3 + $0x8] sm:$0xff]  }
 0x162   : > { %v1696_v50 = vrot.slane %v4632_v37, 2  ;;  %v4669_v33 = vrot.slane %v5746_v55, 2  ;;  %v2374_v30 = vcombine.low %v4518_v59, %v4603_v40  ;;  %v1372_v58 = vadd.f32 %v1315_v4, %v1214_v8  ;;  %1605 = vrot.lane.b32.xlu0 %v4630_v42, %s3256_s12  ;;  %v3229_v14 = vld [vmem:[%s5492_s3 + $0x50] sm:$0xff]  }
 0x163   : > { %v1049_v54 = vsel %vm660_vm2, %v5744_v13, %v5742_v34  ;;  %v1316_v34 = vsel %vm501_vm1, %v1314_v48, %v1315_v4  ;;  %v1472_v13 = vrot.slane %v1403_v5, 2  ;;  %v4684_v23 = vsel %vm660_vm2, %v1693_v1, %v4644_v46  ;;  %2999 = vmatpush3.bf16.msra.mxu0 %v3228_v20 }
 0x164   : > { %5747 = vst [vmem:[#allocation28_spill] sm:$0xff] %v4669_v33  ;;  %v1117_v60 = vadd.f32 %v1049_v54, %v5749_v32  ;;  %5750 = vst [vmem:[#allocation30_spill] sm:$0xff] %v4684_v23  ;;  %v1371_v45 = vadd.f32 %v1316_v34, %v1213_v0  ;;  %v2467_v62 = vpack.c.bf16 %v2377_v29, %v2374_v30  ;;  %v5751_v54 = vld [vmem:[#allocation25_spill] sm:$0xff]  ;;  %v1872_v8 = vrot.slane %v4657_v11, 2 }
 0x165   : > { %1713 = vrot.lane.b32.xlu1 %v5751_v54, %s3255_s7  ;;  %v1159_v4 = vmul.f32 %v3393_v18, %v5748_v22  ;;  %v4696_v5 = vsel %vm660_vm2, %v1696_v50, %v4669_v33  ;;  %v4699_v48 = vrot.slane %v4665_v28, 2  ;;  %v1275_v1 = vrot.slane %v1219_v38, 1  ;;  %3000 = vmatprep.subr.bf16.mxu0 %v3229_v14  ;;  %v3230_v18 = vld [vmem:[%s5492_s3 + $0x10] sm:$0xff]   ;;  %v5754_v38 = vld [vmem:[#allocation33_spill] sm:$0xff] }
 0x166   : > { %v1377_v0 = vmul.f32 %v4225_v9, %v5748_v22  ;;  %3102 = vmatmul.mubr.msk.bf16.gmra.mrb[20].mxu1 %vm2099_vm3, %v2467_v62  ;;  %v2328_v29 = vcombine.high %v4684_v23, %v4684_v23  ;;  %1885 = vrot.lane.b32.xlu0 %v5751_v54, %s3256_s12  ;;  %v3231_v9 = vld [vmem:[%s5492_s3 + $0x58] sm:$0xff]   ;;  %v4716_v50 = vadd.f32 %v1473_v2, %v1372_v58  ;;  %v4720_v32 = vrot.slane %v5754_v38, 1  ;;  %v5758_v62 = vld [vmem:[#allocation14_spill] sm:$0xff] }
 0x167   : > { %5752 = vst [vmem:[#allocation31_spill] sm:$0xff] %v4699_v48  ;;  %v1187_v16 = vadd.f32 %v1159_v4, %v1117_v60  ;;  %3105 = vmatprep.mubr.msk.bf16.mxu1 %vm3253_vm0, %v5641_v61  ;;  %v1474_v22 = vsel %vm660_vm2, %v1472_v13, %v1473_v2  ;;  %v2383_v60 = vcombine.low %v4644_v46, %v4696_v5  ;;  %v3232_v14 = vld [vmem:[%s5492_s3 + $0x18] sm:$0xff]   ;;  %v4749_v54 = vrot.slane %v5758_v62, 1 }
 0x168   : > { %5753 = vst [vmem:[#allocation34_spill] sm:$0xff] %v4716_v50  ;;  %5755 = vst [vmem:[#allocation35_spill] sm:$0xff] %v4720_v32  ;;  %v4726_v30 = vadd.f32 %v1474_v22, %v1371_v45  ;;  %v4730_v20 = vsel %vm660_vm2, %v1872_v8, %v4699_v48  ;;  %v1277_v58 = vsel %vm501_vm1, %v1275_v1, %v1276_v53  ;;  %v1433_v2 = vrot.slane %v1377_v0, 2  ;;  %v3233_v45 = vld [vmem:[%s5492_s3 + $0x60] sm:$0xff]  }
 0x169   : > { %1601 = vrot.lane.b32.xlu1 %v4505_v12, %s3256_s12  ;;  %5757 = vst [vmem:[#allocation36_spill] sm:$0xff] %v4730_v20  ;;  %3001 = vmatpush3.bf16.msra.mxu0 %v3230_v18  ;;  %v2380_v34 = vcombine.low %v4684_v23, %v2328_v29  ;;  %v1345_v13 = vadd.f32 %v1277_v58, %v1187_v16  ;;  %v5759_v8 = vrot.slane %v4447_v39, 2  ;;  %v2097_v0 = vrot.slane %v4716_v50, 2  ;;  %v5760_v39 = vld [vmem:[#allocation7_spill] sm:$0xff]  ;;  %v3234_v22 = vld [vmem:[%s5492_s3 + $0x20] sm:$0xff]  }
 0x16a   : > { %5756 = vst [vmem:[#allocation23_spill] sm:$0xff] %v4726_v30  ;;  %3002 = vmatprep.subr.bf16.mxu0 %v3231_v9  ;;  %2038 = vrot.lane.b32.xlu0 %v4720_v32, %s3254_s6  ;;  %v2336_v53 = vcombine.high %v4730_v20, %v4730_v20  ;;  %v2096_v1 = vrot.slane %v4726_v30, 2  ;;  %v1558_v16 = vrot.slane %v5760_v39, 1  ;;  %v5761_v9 = vld [vmem:[#allocation26_spill] sm:$0xff] }
 0x16b   : > { %v2470_v21 = vpack.c.bf16 %v2383_v60, %v2380_v34  ;;  %v1435_v4 = vsel %vm660_vm2, %v1433_v2, %v5759_v8  ;;  %v3235_v60 = vld [vmem:[%s5492_s3 + $0x68] sm:$0xff]  }
 0x16c   : > { %v4759_v29 = vadd.f32 %v1435_v4, %v1345_v13  ;;  %v2389_v18 = vcombine.low %v4730_v20, %v2336_v53  ;;  %v2098_v58 = vsel %vm660_vm2, %v2096_v1, %v2097_v0  ;;  %v5762_v13 = vld [vmem:[#allocation18_spill] sm:$0xff]  ;;  %v3236_v53 = vld [vmem:[%s5492_s3 + $0x28] sm:$0xff]   ;;  %v3237_v1 = vld [vmem:[%s5492_s3 + $0x70] sm:$0xff]  }
 0x16d   : > { %1709 = vrot.lane.b32.xlu1 %v5733_v43, %s3255_s7  ;;  %3003 = vmatpush3.bf16.msra.mxu0 %v3232_v14  ;;  %v2332_v43 = vcombine.high %v4696_v5, %v4696_v5  ;;  %v1666_v14 = vrot.slane %v5760_v39, 2  ;;  %v2340_v4 = vcombine.high %v2098_v58, %v2098_v58 }
 0x16e   : > { %3106 = vmatmul.mubr.msk.bf16.gmra.mrb[24].mxu1 %vm2099_vm3, %v2470_v21  ;;  %3004 = vmatprep.subr.bf16.mxu0 %v3233_v45  ;;  %v1555_v34 = vrot.slane %v4759_v29, 1  ;;  %v4783_v45 = vsel %vm501_vm1, %v1558_v16, %v4551_v15  ;;  %v1663_v21 = vrot.slane %v4759_v29, 2 }
 0x16f   : > { %2034 = vrot.lane.b32.xlu0 %v4749_v54, %s3254_s6  ;;  %3109 = vmatprep.mubr.msk.bf16.mxu1 %vm3253_vm0, %v5641_v61  ;;  %v2386_v2 = vcombine.low %v2332_v43, %v4669_v33  ;;  %v5763_v43 = vrot.slane %v4485_v52, 1 }
 0x171   : > { %1879 = vrot.lane.b32.xlu1 %v5761_v9, %s3256_s12  ;;  %3005 = vmatpush3.bf16.msra.mxu0 %v3234_v22  ;;  %v2473_v8 = vpack.c.bf16 %v2389_v18, %v2386_v2  ;;  %v1557_v16 = vsel %vm501_vm1, %v1555_v34, %v5763_v43  ;;  %v3238_v22 = vld [vmem:[%s5492_s3 + $0x30] sm:$0xff]   ;;  %v1668_v18 = vsel %vm660_vm2, %v1666_v14, %v4366_v24  ;;  %v3239_v34 = vld [vmem:[%s5492_s3 + $0x78] sm:$0xff]   ;;  %v5766_v14 = vld [vmem:[#allocation22_spill] sm:$0xff] }
 0x172   : > { %3006 = vmatprep.subr.bf16.mxu0 %v3235_v60  ;;  %v5764_v60 = vrot.slane %v4485_v52, 2  ;;  %v5765_v43 = vld [vmem:[#allocation21_spill] sm:$0xff]  ;;  %v2392_v24 = vcombine.low %v4699_v48, %v2098_v58  ;;  %v1564_v62 = vrot.slane %v5766_v14, 1  ;;  %v1588_v48 = vrot.slane %v4632_v37, 1 }
 0x173   : > { %1893 = vrot.lane.b32.xlu0 %v5762_v13, %s3256_s12  ;;  %v1561_v20 = vrot.slane %v5765_v43, 1 }
 0x174   : > { %v1665_v2 = vsel %vm660_vm2, %v1663_v21, %v5764_v60  ;;  %v5767_v21 = vld [vmem:[#allocation9_spill] sm:$0xff] }
 0x175   : > { %1595 = vrot.lane.b32.xlu1 %v4783_v45, %s3256_s12  ;;  %3007 = vmatpush3.bf16.msra.mxu0 %v3236_v53  ;;  %v2395_v53 = vcombine.low %v2340_v4, %v2097_v0  ;;  %v1567_v60 = vrot.slane %v5767_v21, 1  ;;  %v3240_v0 = vld [vmem:[%s5492_s3 + $0x38] sm:$0xff]   ;;  %v4826_v58 = vsel %vm501_vm1, %v1561_v20, %v4505_v12  ;;  %v4831_v4 = vsel %vm501_vm1, %v1564_v62, %v4630_v42 }
 0x176   : > { %3110 = vmatmul.mubr.msk.bf16.gmra.mrb[28].mxu1 %vm2099_vm3, %v2473_v8  ;;  %3008 = vmatprep.subr.bf16.mxu0 %v3237_v1  ;;  %v3133_v8 = vpack.i.bf16 %v1557_v16, %v1668_v18  ;;  %v5768_v1 = vld [vmem:[#allocation27_spill] sm:$0xff]  ;;  %v3153_v62 = vpack.i.bf16 %v5761_v9, %v5767_v21 }
 0x177   : > { %1609 = vrot.lane.b32.xlu0 %v4749_v54, %s3256_s12  ;;  %3113 = vmatprep.mubr.msk.bf16.mxu1 %vm3253_vm0, %v5641_v61  ;;  %v3138_v61 = vpack.i.bf16 %v1665_v2, %v5765_v43  ;;  %v2476_v30 = vpack.c.bf16 %v2395_v53, %v2392_v24  ;;  %v3148_v16 = vpack.i.bf16 %v4826_v58, %v5768_v1  ;;  %v5772_v53 = vld [vmem:[#allocation11_spill] sm:$0xff]  ;;  %v4871_v24 = vpop.permute.xlu1 %1775 }
 0x178   : > { %v5773_v9 = vld [vmem:[#allocation19_spill] sm:$0xff] }
 0x179   : > { %1703 = vrot.lane.b32.xlu1 %v1668_v18, %s3255_s7  ;;  %3009 = vmatpush3.bf16.msra.mxu0 %v3238_v22  ;;  %v4839_v22 = vsel %vm501_vm1, %v1567_v60, %v4749_v54  ;;  %v5770_v18 = vld [vmem:[#allocation12_spill] sm:$0xff]  ;;  %v3168_v60 = vpack.i.bf16 %v5772_v53, %v4279_v36 }
 0x17a   : > { %3010 = vmatprep.subr.bf16.mxu0 %v3239_v34  ;;  %5769 = vst [vmem:[#allocation37_spill] sm:$0xff] %v4839_v22  ;;  %v3158_v20 = vpack.i.bf16 %v5766_v14, %v4839_v22  ;;  %v1570_v2 = vrot.slane %v5770_v18, 1 }
 0x17b   : > { %3134 = vrot.lane.b32.xlu0 %v3133_v8, %s3256_s12  ;;  %v4867_v8 = vrot.slane %v4196_v63, 1 }
 0x17c   : > { %v4858_v34 = vsel %vm501_vm1, %v1570_v2, %v4720_v32  ;;  %v4908_v2 = vpop.permute.xlu0 %1951 }
 0x17d   : > { %3139 = vrot.lane.b32.xlu1 %v3138_v61, %s3255_s7  ;;  %3011 = vmatpush3.bf16.msra.mxu0 %v3240_v0  ;;  %5771 = vst [vmem:[#allocation20_spill] sm:$0xff] %v4858_v34  ;;  %5774 = vst [vmem:[#allocation5_spill] sm:$0xff] %v4867_v8  ;;  %v4879_v61 = vpop.permute.xlu1 %1779  ;;  %v3163_v0 = vpack.i.bf16 %v4839_v22, %v5773_v9 }
 0x17e   : > { %3114 = vmatmul.mubr.msk.bf16.gmra.mrb[32].mxu1 %vm2099_vm3, %v2476_v30  ;;  %v3143_v30 = vpack.i.bf16 %v5760_v39, %v4826_v58 }
 0x17f   : > { %2028 = vrot.lane.b32.xlu0 %v4831_v4, %s3254_s6 }
 0x181   : > { %3149 = vrot.lane.b32.xlu1 %v3148_v16, %s3256_s12  ;;  %v1576_v16 = vrot.slane %v4473_v56, 1 }
 0x183   : > { %3144 = vrot.lane.b32.xlu0 %v3143_v30, %s3254_s6  ;;  %v4892_v30 = vrot.slane %v5707_v17, 1 }
 0x185   : > { %3159 = vrot.lane.b32.xlu1 %v3158_v20, %s3254_s6  ;;  %5775 = vst [vmem:[#allocation4_spill] sm:$0xff] %v4892_v30  ;;  %v1573_v20 = vrot.slane %v4279_v36, 1 }
 0x187   : > { %3154 = vrot.lane.b32.xlu0 %v3153_v62, %s3255_s7 }
 0x189   : > { %1895 = vrot.lane.b32.xlu1 %v4481_v51, %s3256_s12 }
 0x18b   : > { %1603 = vrot.lane.b32.xlu0 %v4831_v4, %s3256_s12 }
 0x18d   : > { %1611 = vrot.lane.b32.xlu1 %v4858_v34, %s3256_s12 }
 0x18f   : > { %1887 = vrot.lane.b32.xlu0 %v5772_v53, %s3256_s12  ;;  %v4912_v53 = vsel %vm501_vm1, %v1573_v20, %v4867_v8 }
 0x190   : > { %5777 = vst [vmem:[#allocation2_spill] sm:$0xff] %v4912_v53  ;;  %v3178_v20 = vpack.i.bf16 %v4912_v53, %v4502_v31 }
 0x191   : > { %1719 = vrot.lane.b32.xlu1 %v5773_v9, %s3255_s7  ;;  %v1579_v9 = vrot.slane %v4515_v49, 1 }
 0x193   : > { %1711 = vrot.lane.b32.xlu0 %v5768_v1, %s3255_s7  ;;  %v4888_v1 = vpop.permute.xlu1 %1963 }
 0x195   : > { %2042 = vrot.lane.b32.xlu1 %v4867_v8, %s3254_s6 }
 0x197   : > { %2036 = vrot.lane.b32.xlu0 %v4858_v34, %s3254_s6  ;;  %v4904_v62 = vpop.permute.xlu1 %1787 }
 0x199   : > { %1791 = vrot.lane.b32.xlu1 %v5754_v38, %s3254_s6 }
 0x19b   : > { %1717 = vrot.lane.b32.xlu0 %v5745_v44, %s3255_s7  ;;  %v4899_v44 = vsel %vm501_vm1, %v1576_v16, %v4892_v30  ;;  %v4926_v16 = vpop.permute.xlu1 %1959 }
 0x19c   : > { %5776 = vst [vmem:[#allocation8_spill] sm:$0xff] %v4899_v44  ;;  %5779 = vst [vmem:[#allocation25_spill] sm:$0xff] %v4926_v16  ;;  %v3198_v16 = vpack.i.bf16 %v4548_v47, %v4605_v26 }
 0x19d   : > { %3169 = vrot.lane.b32.xlu1 %v3168_v60, %s3255_s7  ;;  %v4918_v60 = vrot.slane %v5716_v41, 1 }
 0x19f   : > { %3164 = vrot.lane.b32.xlu0 %v3163_v0, %s3256_s12  ;;  %5778 = vst [vmem:[#allocation13_spill] sm:$0xff] %v4918_v60  ;;  %v4922_v0 = vpop.permute.xlu0 %1955  ;;  %v4942_v34 = vpop.permute.xlu1 %1783 }
 0x1a0   : > { %5781 = vst [vmem:[#allocation26_spill] sm:$0xff] %v4942_v34 }
 0x1a1   : > { %1613 = vrot.lane.b32.xlu1 %v4720_v32, %s3256_s12 }
 0x1a3   : > { %2044 = vrot.lane.b32.xlu0 %v4899_v44, %s3254_s6  ;;  %v4936_v38 = vpop.permute.xlu0 %1967 }
 0x1a4   : > { %5780 = vst [vmem:[#allocation7_spill] sm:$0xff] %v4936_v38 }
 0x1a5   : > { %1721 = vrot.lane.b32.xlu1 %v5762_v13, %s3255_s7  ;;  %v3173_v13 = vpack.i.bf16 %v5770_v18, %v4912_v53 }
 0x1a7   : > { %1793 = vrot.lane.b32.xlu0 %v4279_v36, %s3254_s6  ;;  %v4933_v36 = vsel %vm501_vm1, %v1579_v9, %v4918_v60  ;;  %v4951_v9 = vpop.permute.xlu1 %1953 }
 0x1a9   : > { %1795 = vrot.lane.b32.xlu1 %v4196_v63, %s3254_s6  ;;  %v3188_v63 = vpack.i.bf16 %v4473_v56, %v4933_v36 }
 0x1ab   : > { %3174 = vrot.lane.b32.xlu0 %v3173_v13, %s3254_s6  ;;  %v4947_v13 = vpop.permute.xlu0 %1777  ;;  %v4962_v56 = vpop.permute.xlu1 %1961 }
 0x1ac   : > { %5783 = vst [vmem:[#allocation21_spill] sm:$0xff] %v4962_v56 }
 0x1ad   : > { %3179 = vrot.lane.b32.xlu1 %v3178_v20, %s3256_s12  ;;  %v3183_v20 = vpack.i.bf16 %v4481_v51, %v4515_v49 }
 0x1af   : > { %1897 = vrot.lane.b32.xlu0 %v4468_v7, %s3256_s12 }
 0x1b1   : > { %3189 = vrot.lane.b32.xlu1 %v3188_v63, %s3254_s6  ;;  %v4959_v63 = vpop.permute.xlu0 %1785 }
 0x1b2   : > { %5782 = vst [vmem:[#allocation18_spill] sm:$0xff] %v4959_v63  ;;  %v5051_v63 = vrot.slane %v4609_v27, 1 }
 0x1b3   : > { %1971 = vrot.lane.b32.xlu0 %v5707_v17, %s3255_s7 }
 0x1b5   : > { %1905 = vrot.lane.b32.xlu1 %v4518_v59, %s3256_s12  ;;  %v1878_v21 = vpop.permute.xlu0 %1877 }
 0x1b7   : > { %2046 = vrot.lane.b32.xlu0 %v4892_v30, %s3254_s6 }
 0x1b9   : > { %1729 = vrot.lane.b32.xlu1 %v4476_v19, %s3255_s7  ;;  %v4970_v38 = vpop.f32.mrb[0].mxu1 }
 0x1ba   : > { %5784 = vst [vmem:[#allocation27_spill] sm:$0xff] %v4970_v38  ;;  %v3083_v51 = vpop.f32.mrb[1].mxu1 }
 0x1bb   : > { %3184 = vrot.lane.b32.xlu0 %v3183_v20, %s3255_s7  ;;  %v4974_v32 = vpop.f32.mrb[2].mxu1 }
 0x1bc   : > { %5786 = vst [vmem:[#allocation19_spill] sm:$0xff] %v4974_v32  ;;  %v3084_v20 = vpop.f32.mrb[3].mxu1 }
 0x1bd   : > { %1979 = vrot.lane.b32.xlu1 %v4543_v6, %s3255_s7  ;;  %v4972_v18 = vpop.permute.xlu1 %1969 }
 0x1be   : > { %5785 = vst [vmem:[#allocation11_spill] sm:$0xff] %v4972_v18 }
 0x1bf   : > { %1621 = vrot.lane.b32.xlu0 %v4892_v30, %s3256_s12  ;;  %v4980_v53 = vpop.permute.xlu0 %1593 }
 0x1c1   : > { %1803 = vrot.lane.b32.xlu1 %v5716_v41, %s3254_s6  ;;  %v4982_v30 = vpop.permute.xlu1 %2026 }
 0x1c3   : > { %1619 = vrot.lane.b32.xlu0 %v4899_v44, %s3256_s12 }
 0x1c4   : > { %v4988_v51 = vpop.permute.xlu0 %1701 }
 0x1c5   : > { %1977 = vrot.lane.b32.xlu1 %v4570_v3, %s3255_s7  ;;  %v1598_v32 = vpop.permute.xlu1 %1597 }
 0x1c7   : > { %1903 = vrot.lane.b32.xlu0 %v4548_v47, %s3256_s12 }
 0x1c9   : > { %1617 = vrot.lane.b32.xlu1 %v4867_v8, %s3256_s12  ;;  %v4996_v38 = vpop.permute.xlu1 %1705  ;;  %v5005_v8 = vrot.slane %v4543_v6, 1 }
 0x1ca   : > { %v4994_v20 = vpop.permute.xlu0 %1881 }
 0x1cb   : > { %1727 = vrot.lane.b32.xlu0 %v4502_v31, %s3255_s7 }
 0x1cd   : > { %1975 = vrot.lane.b32.xlu1 %v5716_v41, %s3255_s7 }
 0x1cf   : > { %1901 = vrot.lane.b32.xlu0 %v4476_v19, %s3256_s12  ;;  %v1582_v19 = vrot.slane %v4570_v3, 1 }
 0x1d0   : > { %v5002_v44 = vpop.permute.xlu0 %2030 }
 0x1d1   : > { %1725 = vrot.lane.b32.xlu1 %v4468_v7, %s3255_s7  ;;  %v5026_v50 = vsel %vm501_vm1, %v1582_v19, %v5005_v8 }
 0x1d2   : > { %5787 = vst [vmem:[#allocation38_spill] sm:$0xff] %v5026_v50 }
 0x1d3   : > { %v5007_v18 = vpop.permute.xlu1 %1889  ;;  %2054 = vrot.lane.b32.xlu0 %v5005_v8, %s3254_s6 }
 0x1d4   : > { %v5013_v31 = vpop.permute.xlu0 %1605 }
 0x1d5   : > { %1799 = vrot.lane.b32.xlu1 %v5707_v17, %s3254_s6 }
 0x1d7   : > { %v5016_v41 = vpop.permute.xlu1 %1713  ;;  %1801 = vrot.lane.b32.xlu0 %v4515_v49, %s3254_s6 }
 0x1d8   : > { %v5022_v7 = vpop.permute.xlu0 %1885 }
 0x1d9   : > { %1911 = vrot.lane.b32.xlu1 %v4684_v23, %s3256_s12 }
 0x1db   : > { %v5028_v33 = vpop.permute.xlu1 %1601  ;;  %2052 = vrot.lane.b32.xlu0 %v5026_v50, %s3254_s6 }
 0x1dc   : > { %5788 = vst [vmem:[#allocation39_spill] sm:$0xff] %v5028_v33  ;;  %v5034_v17 = vpop.permute.xlu0 %2038 }
 0x1dd   : > { %1627 = vrot.lane.b32.xlu1 %v5026_v50, %s3256_s12 }
 0x1df   : > { %v5036_v49 = vpop.permute.xlu1 %1709  ;;  %2050 = vrot.lane.b32.xlu0 %v4918_v60, %s3254_s6 }
 0x1e0   : > { %5789 = vst [vmem:[#allocation40_spill] sm:$0xff] %v5036_v49 }
 0x1e1   : > { %1985 = vrot.lane.b32.xlu1 %v4632_v37, %s3255_s7  ;;  %v5042_v19 = vpop.permute.xlu0 %2034 }
 0x1e2   : > { %5790 = vst [vmem:[#allocation41_spill] sm:$0xff] %v5042_v19 }
 0x1e3   : > { %v1880_v23 = vpop.permute.xlu1 %1879  ;;  %1909 = vrot.lane.b32.xlu0 %v4573_v35, %s3256_s12 }
 0x1e4   : > { %v2176_v10 = vsel %vm2099_vm3, %v4826_v58, %v1880_v23  ;;  %v2177_v58 = vsel %vm2099_vm3, %v4505_v12, %v4994_v20 }
 0x1e5   : > { %1735 = vrot.lane.b32.xlu1 %v4603_v40, %s3255_s7  ;;  %v5048_v50 = vpop.permute.xlu0 %1893 }
 0x1e6   : > { %5791 = vst [vmem:[#allocation42_spill] sm:$0xff] %v5048_v50 }
 0x1e7   : > { %v1596_v34 = vpop.permute.xlu1 %1595  ;;  %1625 = vrot.lane.b32.xlu0 %v4918_v60, %s3256_s12  ;;  %v5067_v60 = vrot.slane %v5746_v55, 1 }
 0x1e8   : > { %v2102_v47 = vsel %vm2099_vm3, %v5760_v39, %v1596_v34  ;;  %v2103_v39 = vsel %vm2099_vm3, %v5695_v25, %v1598_v32  ;;  %v2200_v34 = vsel %vm2124_vm4, %v2176_v10, %v4951_v9 }
 0x1e9   : > { %2058 = vrot.lane.b32.xlu1 %v5051_v63, %s3254_s6  ;;  %v5057_v19 = vpop.permute.xlu0 %1609 }
 0x1ea   : > { %5792 = vst [vmem:[#allocation43_spill] sm:$0xff] %v5057_v19  ;;  %v2175_v19 = vsel %vm2099_vm3, %v4551_v15, %v1878_v21 }
 0x1eb   : > { %v1704_v56 = vpop.permute.xlu1 %1703  ;;  %1983 = vrot.lane.b32.xlu0 %v4609_v27, %s3255_s7  ;;  %v2199_v23 = vsel %vm2124_vm4, %v2175_v19, %v4908_v2 }
 0x1ec   : > { %v2127_v15 = vsel %vm2124_vm4, %v2102_v47, %v1704_v56 }
 0x1ed   : > { %1807 = vrot.lane.b32.xlu1 %v4543_v6, %s3254_s6  ;;  %v3135_v50 = vpop.permute.xlu0 %3134  ;;  %v3193_v6 = vpack.i.bf16 %v4933_v36, %v4603_v40  ;;  %v2101_v40 = vsel %vm2099_vm3, %v4485_v52, %v4980_v53  ;;  %v2128_v52 = vsel %vm2124_vm4, %v2103_v39, %v4996_v38  ;;  %v2223_v38 = vsel %vm2149_vm5, %v2199_v23, %v4982_v30 }
 0x1ee   : > { %v3137_v33 = vunpack.i.h.bf16 %v3135_v50  ;;  %v3136_v55 = vunpack.i.l.bf16 %v3135_v50  ;;  %v5091_v50 = vsel %vm501_vm1, %v1588_v48, %v5067_v60  ;;  %v2152_v48 = vsel %vm2149_vm5, %v2127_v15, %v4947_v13 }
 0x1ef   : > { %v3140_v49 = vpop.permute.xlu1 %3139  ;;  %1733 = vrot.lane.b32.xlu0 %v4518_v59, %s3255_s7  ;;  %v1585_v59 = vrot.slane %v4605_v26, 1  ;;  %v2201_v53 = vsel %vm2124_vm4, %v2177_v58, %v4922_v0 }
 0x1f0   : > { %v3142_v22 = vunpack.i.h.bf16 %v3140_v49  ;;  %v3141_v14 = vunpack.i.l.bf16 %v3140_v49  ;;  %v2126_v49 = vsel %vm2124_vm4, %v2101_v40, %v4988_v51  ;;  %v2100_v25 = vsel %vm2099_vm3, %v4759_v29, %v3137_v33 }
 0x1f1   : > { %3199 = vrot.lane.b32.xlu1 %v3198_v16, %s3255_s7  ;;  %v2029_v21 = vpop.permute.xlu0 %2028  ;;  %v2174_v12 = vsel %vm2099_vm3, %v4783_v45, %v3136_v55  ;;  %v2151_v29 = vsel %vm2149_vm5, %v2126_v49, %v4871_v24  ;;  %v2153_v55 = vsel %vm2149_vm5, %v2128_v52, %v4879_v61 }
 0x1f2   : > { %v2224_v32 = vsel %vm2149_vm5, %v2200_v34, %v2029_v21  ;;  %v2125_v10 = vsel %vm2124_vm4, %v2100_v25, %v3142_v22  ;;  %v2198_v33 = vsel %vm2124_vm4, %v2174_v12, %v3141_v14  ;;  %v2942_v45 = vcombine.low %v2151_v29, %v2152_v48 }
 0x1f3   : > { %v3150_v56 = vpop.permute.xlu1 %3149  ;;  %3194 = vrot.lane.b32.xlu0 %v3193_v6, %s3256_s12  ;;  %v2943_v30 = vcombine.low %v2223_v38, %v2224_v32  ;;  %v2225_v14 = vsel %vm2149_vm5, %v2201_v53, %v5002_v44  ;;  %v5134_v44 = vsel %vm501_vm1, %v1585_v59, %v5051_v63  ;;  %v2299_v58 = vcombine.high %v2152_v48, %v2224_v32 }
 0x1f4   : > { %v3151_v2 = vunpack.i.l.bf16 %v3150_v56  ;;  %v3152_v22 = vunpack.i.h.bf16 %v3150_v56  ;;  %v2301_v15 = vcombine.low %v2153_v55, %v2225_v14  ;;  %v5144_v56 = vrot.slane %v4665_v28, 1  ;;  %v5793_v14 = vld [vmem:[#allocation22_spill] sm:$0xff] }
 0x1f5   : > { %1629 = vrot.lane.b32.xlu1 %v5005_v8, %s3256_s12  ;;  %v3145_v6 = vpop.permute.xlu0 %3144  ;;  %v3203_v25 = vpack.i.bf16 %v4570_v3, %v5134_v44  ;;  %v2944_v53 = vcombine.low %v2299_v58, %v2153_v55  ;;  %v5802_v58 = vld [vmem:[#allocation41_spill] sm:$0xff] }
 0x1f6   : > { %v3147_v16 = vunpack.i.h.bf16 %v3145_v6  ;;  %v3146_v13 = vunpack.i.l.bf16 %v3145_v6  ;;  %v2178_v0 = vsel %vm2099_vm3, %v4831_v4, %v3151_v2  ;;  %v2104_v39 = vsel %vm2099_vm3, %v5765_v43, %v3152_v22 }
 0x1f7   : > { %v3160_v9 = vpop.permute.xlu1 %3159  ;;  %2060 = vrot.lane.b32.xlu0 %v5091_v50, %s3254_s6  ;;  %v1845_v4 = vrot.slane %v4657_v11, 1  ;;  %v5146_v49 = vpop.f32.mrb[4].mxu1  ;;  %v2945_v59 = vcombine.high %v2224_v32, %v2301_v15  ;;  %v3208_v32 = vpack.i.bf16 %v5134_v44, %v4696_v5 }
 0x1f8   : > { %v2222_v24 = vsel %vm2149_vm5, %v2198_v33, %v3146_v13  ;;  %v2150_v51 = vsel %vm2149_vm5, %v2125_v10, %v3147_v16  ;;  %v3161_v19 = vunpack.i.l.bf16 %v3160_v9  ;;  %v3087_v43 = vpop.f32.mrb[5].mxu1  ;;  %v2107_v16 = vsel %vm2099_vm3, %v5740_v57, %v5013_v31 }
 0x1f9   : > { %1737 = vrot.lane.b32.xlu1 %v4573_v35, %s3255_s7  ;;  %v3155_v61 = vpop.permute.xlu0 %3154  ;;  %v2451_v20 = vpack.c.bf16 %v2943_v30, %v2222_v24  ;;  %v2450_v47 = vpack.c.bf16 %v2942_v45, %v2150_v51  ;;  %v3162_v35 = vunpack.i.h.bf16 %v3160_v9  ;;  %v5154_v38 = vpop.f32.mrb[6].mxu1  ;;  %v5165_v29 = vsel %vm501_vm1, %v1845_v4, %v5144_v56  ;;  %v5794_v51 = vld [vmem:[#allocation37_spill] sm:$0xff] }
 0x1fa   : > { %v3157_v21 = vunpack.i.h.bf16 %v3155_v61  ;;  %v3156_v40 = vunpack.i.l.bf16 %v3155_v61  ;;  %v3088_v2 = vpop.f32.mrb[7].mxu1  ;;  %v2181_v9 = vsel %vm2099_vm3, %v4749_v54, %v5007_v18  ;;  %v2132_v45 = vsel %vm2124_vm4, %v2107_v16, %v5016_v41 }
 0x1fb   : > { %v5136_v23 = vpop.permute.xlu1 %1895  ;;  %1809 = vrot.lane.b32.xlu0 %v4605_v26, %s3254_s6  ;;  %2680 = vmatprep.mubr.bf16.mxu0 %v2451_v20  ;;  %v3218_v55 = vpack.i.bf16 %v4632_v37, %v5165_v29  ;;  %v2157_v57 = vsel %vm2149_vm5, %v2132_v45, %v4904_v62  ;;  %v2205_v54 = vsel %vm2124_vm4, %v2181_v9, %v4888_v1  ;;  %v5795_v20 = vld [vmem:[#allocation6_spill] sm:$0xff]  ;;  %v5796_v1 = vld [vmem:[#allocation39_spill] sm:$0xff] }
 0x1fc   : > { %v2202_v52 = vsel %vm2124_vm4, %v2178_v0, %v3156_v40  ;;  %2681 = vmatmul.mubr.bf16.vlgmr.msra.gmra.mrb[0].mxu0 %v2450_v47  ;;  %v2129_v10 = vsel %vm2124_vm4, %v2104_v39, %v3157_v21  ;;  %v2179_v41 = vsel %vm2099_vm3, %v4630_v42, %v5022_v7  ;;  %v2229_v31 = vsel %vm2149_vm5, %v2205_v54, %v5034_v17  ;;  %v5798_v42 = vld [vmem:[#allocation31_spill] sm:$0xff]  ;;  %v5799_v7 = vld [vmem:[#allocation25_spill] sm:$0xff]  ;;  %v5800_v21 = vld [vmem:[#allocation40_spill] sm:$0xff] }
 0x1fd   : > { %1811 = vrot.lane.b32.xlu1 %v4609_v27, %s3254_s6  ;;  %v1604_v34 = vpop.permute.xlu0 %1603  ;;  %v2226_v12 = vsel %vm2149_vm5, %v2202_v52, %v3161_v19  ;;  %v2154_v33 = vsel %vm2149_vm5, %v2129_v10, %v3162_v35  ;;  %v5797_v19 = vld [vmem:[#allocation16_spill] sm:$0xff]  ;;  %v2309_v17 = vcombine.low %v2157_v57, %v2229_v31  ;;  %v2203_v15 = vsel %vm2124_vm4, %v2179_v41, %v5799_v7  ;;  %v5801_v39 = vld [vmem:[#allocation21_spill] sm:$0xff]  ;;  %v5803_v52 = vld [vmem:[#allocation18_spill] sm:$0xff] }
 0x1fe   : > { %v2454_v6 = vpack.c.bf16 %v2226_v12, %v2945_v59  ;;  %v2453_v22 = vpack.c.bf16 %v2154_v33, %v2944_v53  ;;  %v2106_v24 = vsel %vm2099_vm3, %v5793_v14, %v1604_v34  ;;  %v2105_v47 = vsel %vm2099_vm3, %v5797_v19, %v5796_v1  ;;  %v5804_v2 = vld [vmem:[#allocation26_spill] sm:$0xff]  ;;  %v5805_v53 = vld [vmem:[#allocation28_spill] sm:$0xff] }
 0x1ff   : > { %v5157_v48 = vpop.permute.xlu1 %1611  ;;  %3204 = vrot.lane.b32.xlu0 %v3203_v25, %s3254_s6  ;;  %v2130_v40 = vsel %vm2124_vm4, %v2105_v47, %v5800_v21  ;;  %v2227_v59 = vsel %vm2149_vm5, %v2203_v15, %v5802_v58  ;;  %v5806_v45 = vld [vmem:[#allocation30_spill] sm:$0xff]  ;;  %v5809_v47 = vld [vmem:[#allocation23_spill] sm:$0xff] }
 0x200   : > { %2688 = vmatprep.mubr.bf16.mxu0 %v2454_v6  ;;  %v2155_v33 = vsel %vm2149_vm5, %v2130_v40, %v5804_v2  ;;  %v5808_v1 = vld [vmem:[#allocation2_spill] sm:$0xff]  ;;  %v5812_v21 = vld [vmem:[#allocation43_spill] sm:$0xff] }
 0x201   : > { %3209 = vrot.lane.b32.xlu1 %v3208_v32, %s3256_s12  ;;  %v1888_v13 = vpop.permute.xlu0 %1887  ;;  %v2184_v19 = vsel %vm2099_vm3, %v5808_v1, %v5136_v23  ;;  %v5813_v40 = vld [vmem:[#allocation14_spill] sm:$0xff]  ;;  %v5817_v2 = vld [vmem:[#allocation7_spill] sm:$0xff] }
 0x202   : > { %v2180_v0 = vsel %vm2099_vm3, %v5794_v51, %v1888_v13 }
 0x203   : > { %v5176_v30 = vpop.permute.xlu1 %1719  ;;  %1913 = vrot.lane.b32.xlu0 %v4644_v46, %s3256_s12  ;;  %v2204_v35 = vsel %vm2124_vm4, %v2180_v0, %v5801_v39  ;;  %v2109_v39 = vsel %vm2099_vm3, %v5813_v40, %v5812_v21 }
 0x204   : > { %2689 = vmatmul.mubr.bf16.gmra.mrb[4].mxu0 %v2453_v22  ;;  %v3213_v22 = vpack.i.bf16 %v5806_v45, %v4657_v11 }
 0x205   : > { %3219 = vrot.lane.b32.xlu1 %v3218_v55, %s3254_s6  ;;  %v1712_v18 = vpop.permute.xlu0 %1711 }
 0x206   : > { %v2131_v62 = vsel %vm2124_vm4, %v2106_v24, %v1712_v18  ;;  %v5217_v32 = vpop.f32.mrb[8].mxu1  ;;  %v5807_v24 = vld [vmem:[#allocation34_spill] sm:$0xff] }
 0x207   : > { %v2043_v61 = vpop.permute.xlu1 %2042  ;;  %1987 = vrot.lane.b32.xlu0 %v5795_v20, %s3255_s7  ;;  %v2156_v43 = vsel %vm2149_vm5, %v2131_v62, %v5803_v52  ;;  %v3091_v16 = vpop.f32.mrb[9].mxu1  ;;  %v2022_v40 = vrot.slane %v5807_v24, 1 }
 0x208   : > { %v2946_v13 = vcombine.low %v2155_v33, %v2156_v43  ;;  %v5225_v18 = vpop.f32.mrb[10].mxu1 }
 0x209   : > { %1921 = vrot.lane.b32.xlu1 %v5798_v42, %s3256_s12  ;;  %v2037_v4 = vpop.permute.xlu0 %2036  ;;  %v3092_v31 = vpop.f32.mrb[11].mxu1  ;;  %v5810_v42 = vld [vmem:[#allocation42_spill] sm:$0xff] }
 0x20a   : > { %v2228_v34 = vsel %vm2149_vm5, %v2204_v35, %v2037_v4  ;;  %v5814_v35 = vld [vmem:[#allocation12_spill] sm:$0xff] }
 0x20b   : > { %v1792_v25 = vpop.permute.xlu1 %1791  ;;  %v2307_v12 = vcombine.high %v2156_v43, %v2228_v34  ;;  %v2947_v10 = vcombine.low %v2227_v59, %v2228_v34  ;;  %v2949_v6 = vcombine.high %v2228_v34, %v2309_v17  ;;  %2062 = vrot.lane.b32.xlu0 %v5067_v60, %s3254_s6  ;;  %v5811_v17 = vld [vmem:[#allocation35_spill] sm:$0xff]  ;;  %v2110_v4 = vsel %vm2099_vm3, %v5814_v35, %v5157_v48 }
 0x20c   : > { %v2183_v7 = vsel %vm2099_vm3, %v5811_v17, %v5810_v42  ;;  %v2135_v23 = vsel %vm2124_vm4, %v2110_v4, %v5176_v30  ;;  %v5821_v4 = vld [vmem:[#allocation33_spill] sm:$0xff] }
 0x20d   : > { %1745 = vrot.lane.b32.xlu1 %v5805_v53, %s3255_s7  ;;  %v1718_v9 = vpop.permute.xlu0 %1717  ;;  %v2457_v55 = vpack.c.bf16 %v2949_v6, %v2947_v10  ;;  %v2948_v54 = vcombine.low %v2307_v12, %v2157_v57  ;;  %v5815_v12 = vld [vmem:[#allocation11_spill] sm:$0xff]  ;;  %v5816_v6 = vld [vmem:[#allocation36_spill] sm:$0xff]  ;;  %v2207_v33 = vsel %vm2124_vm4, %v2183_v7, %v5817_v2 }
 0x20e   : > { %v2208_v10 = vsel %vm2124_vm4, %v2184_v19, %v5815_v12  ;;  %v2134_v16 = vsel %vm2124_vm4, %v2109_v39, %v1718_v9  ;;  %v2231_v30 = vsel %vm2149_vm5, %v2207_v33, %v2043_v61 }
 0x20f   : > { %v3170_v41 = vpop.permute.xlu1 %3169  ;;  %3214 = vrot.lane.b32.xlu0 %v3213_v22, %s3255_s7  ;;  %2696 = vmatprep.mubr.bf16.mxu0 %v2457_v55  ;;  %v2456_v14 = vpack.c.bf16 %v2948_v54, %v2946_v13  ;;  %v2159_v45 = vsel %vm2149_vm5, %v2134_v16, %v1792_v25  ;;  %v5818_v55 = vld [vmem:[#allocation9_spill] sm:$0xff] }
 0x210   : > { %v3172_v43 = vunpack.i.h.bf16 %v3170_v41  ;;  %v3171_v34 = vunpack.i.l.bf16 %v3170_v41  ;;  %v5819_v41 = vld [vmem:[#allocation20_spill] sm:$0xff] }
 0x211   : > { %1995 = vrot.lane.b32.xlu1 %v5807_v24, %s3255_s7  ;;  %v3165_v51 = vpop.permute.xlu0 %3164  ;;  %2697 = vmatmul.mubr.bf16.gmra.mrb[8].mxu0 %v2456_v14 }
 0x212   : > { %v3167_v58 = vunpack.i.h.bf16 %v3165_v51  ;;  %v3166_v59 = vunpack.i.l.bf16 %v3165_v51 }
 0x213   : > { %v1614_v0 = vpop.permute.xlu1 %1613  ;;  %1637 = vrot.lane.b32.xlu0 %v5067_v60, %s3256_s12 }
 0x214   : > { %v2108_v54 = vsel %vm2099_vm3, %v5818_v55, %v3167_v58  ;;  %v2182_v31 = vsel %vm2099_vm3, %v5819_v41, %v3166_v59 }
 0x215   : > { %1819 = vrot.lane.b32.xlu1 %v4665_v28, %s3254_s6  ;;  %v2045_v57 = vpop.permute.xlu0 %2044  ;;  %v2206_v1 = vsel %vm2124_vm4, %v2182_v31, %v3171_v34  ;;  %v2021_v34 = vrot.slane %v5809_v47, 1 }
 0x216   : > { %v2232_v48 = vsel %vm2149_vm5, %v2208_v10, %v2045_v57  ;;  %v2133_v57 = vsel %vm2124_vm4, %v2108_v54, %v3172_v43  ;;  %v5822_v54 = vld [vmem:[#allocation17_spill] sm:$0xff] }
 0x217   : > { %v1722_v62 = vpop.permute.xlu1 %1721  ;;  %1635 = vrot.lane.b32.xlu0 %v5091_v50, %s3256_s12  ;;  %v2951_v19 = vcombine.low %v2231_v30, %v2232_v48  ;;  %v2023_v55 = vsel %vm501_vm1, %v2021_v34, %v2022_v40 }
 0x219   : > { %1993 = vrot.lane.b32.xlu1 %v5809_v47, %s3255_s7  ;;  %v1794_v15 = vpop.permute.xlu0 %1793 }
 0x21a   : > { %v2160_v13 = vsel %vm2149_vm5, %v2135_v23, %v1794_v15 }
 0x21b   : > { %v1796_v52 = vpop.permute.xlu1 %1795  ;;  %1919 = vrot.lane.b32.xlu0 %v5816_v6, %s3256_s12  ;;  %v2950_v42 = vcombine.low %v2159_v45, %v2160_v13 }
 0x21d   : > { %1633 = vrot.lane.b32.xlu1 %v5051_v63, %s3256_s12  ;;  %v3175_v22 = vpop.permute.xlu0 %3174 }
 0x21e   : > { %v3177_v14 = vunpack.i.h.bf16 %v3175_v22  ;;  %v3176_v9 = vunpack.i.l.bf16 %v3175_v22 }
 0x21f   : > { %v3180_v51 = vpop.permute.xlu1 %3179  ;;  %1743 = vrot.lane.b32.xlu0 %v4696_v5, %s3255_s7 }
 0x220   : > { %v2230_v61 = vsel %vm2149_vm5, %v2206_v1, %v3176_v9  ;;  %v2158_v25 = vsel %vm2149_vm5, %v2133_v57, %v3177_v14  ;;  %v3182_v6 = vunpack.i.h.bf16 %v3180_v51  ;;  %v3181_v2 = vunpack.i.l.bf16 %v3180_v51 }
 0x221   : > { %1991 = vrot.lane.b32.xlu1 %v4665_v28, %s3255_s7  ;;  %v1898_v17 = vpop.permute.xlu0 %1897  ;;  %v2460_v7 = vpack.c.bf16 %v2951_v19, %v2230_v61  ;;  %v2459_v15 = vpack.c.bf16 %v2950_v42, %v2158_v25  ;;  %v5820_v28 = vld [vmem:[#allocation5_spill] sm:$0xff] }
 0x222   : > { %v2185_v35 = vsel %vm2099_vm3, %v5820_v28, %v1898_v17  ;;  %v2112_v41 = vsel %vm2099_vm3, %v5822_v54, %v3182_v6 }
 0x223   : > { %v3190_v21 = vpop.permute.xlu1 %3189  ;;  %1917 = vrot.lane.b32.xlu0 %v5805_v53, %s3256_s12  ;;  %2704 = vmatprep.mubr.bf16.mxu0 %v2460_v7  ;;  %v2111_v53 = vsel %vm2099_vm3, %v5821_v4, %v1614_v0 }
 0x224   : > { %2705 = vmatmul.mubr.bf16.gmra.mrb[12].mxu0 %v2459_v15  ;;  %v2136_v24 = vsel %vm2124_vm4, %v2111_v53, %v1722_v62  ;;  %v2315_v62 = vcombine.high %v2160_v13, %v2232_v48  ;;  %v3192_v14 = vunpack.i.h.bf16 %v3190_v21  ;;  %v3191_v9 = vunpack.i.l.bf16 %v3190_v21 }
 0x225   : > { %1741 = vrot.lane.b32.xlu1 %v4644_v46, %s3255_s7  ;;  %v1972_v5 = vpop.permute.xlu0 %1971  ;;  %v5292_v59 = vpop.f32.mrb[12].mxu1  ;;  %v2161_v10 = vsel %vm2149_vm5, %v2136_v24, %v1796_v52  ;;  %v5823_v52 = vld [vmem:[#allocation8_spill] sm:$0xff] }
 0x226   : > { %v2209_v58 = vsel %vm2124_vm4, %v2185_v35, %v1972_v5  ;;  %v3095_v23 = vpop.f32.mrb[13].mxu1  ;;  %v2186_v31 = vsel %vm2099_vm3, %v5823_v52, %v3181_v2 }
 0x227   : > { %v5282_v39 = vpop.permute.xlu1 %1905  ;;  %2070 = vrot.lane.b32.xlu0 %v2022_v40, %s3254_s6  ;;  %v5300_v33 = vpop.f32.mrb[14].mxu1 }
 0x228   : > { %v3096_v16 = vpop.f32.mrb[15].mxu1 }
 0x229   : > { %1815 = vrot.lane.b32.xlu1 %v5795_v20, %s3254_s6  ;;  %v2047_v46 = vpop.permute.xlu0 %2046 }
 0x22a   : > { %v2233_v43 = vsel %vm2149_vm5, %v2209_v58, %v2047_v46 }
 0x22b   : > { %v5297_v12 = vpop.permute.xlu1 %1729  ;;  %1817 = vrot.lane.b32.xlu0 %v4657_v11, %s3254_s6  ;;  %v2317_v0 = vcombine.low %v2161_v10, %v2233_v43  ;;  %v2952_v11 = vcombine.low %v2315_v62, %v2161_v10 }
 0x22d   : > { %v3185_v30 = vpop.permute.xlu0 %3184  ;;  %v2953_v51 = vcombine.high %v2232_v48, %v2317_v0 }
 0x22e   : > { %v3187_v45 = vunpack.i.h.bf16 %v3185_v30  ;;  %v3186_v22 = vunpack.i.l.bf16 %v3185_v30 }
 0x22f   : > { %v1980_v47 = vpop.permute.xlu1 %1979  ;;  %2068 = vrot.lane.b32.xlu0 %v2023_v55, %s3254_s6 }
 0x230   : > { %v2137_v57 = vsel %vm2124_vm4, %v2112_v41, %v3187_v45  ;;  %v2210_v13 = vsel %vm2124_vm4, %v2186_v31, %v3186_v22  ;;  %v5312_v1 = vpop.f32.mrb[16].mxu1  ;;  %v5824_v41 = vld [vmem:[#allocation13_spill] sm:$0xff] }
 0x231   : > { %v1622_v19 = vpop.permute.xlu0 %1621  ;;  %v2234_v42 = vsel %vm2149_vm5, %v2210_v13, %v3191_v9  ;;  %v2162_v61 = vsel %vm2149_vm5, %v2137_v57, %v3192_v14  ;;  %v3099_v25 = vpop.f32.mrb[17].mxu1  ;;  %v2189_v52 = vsel %vm2099_vm3, %v5824_v41, %v5282_v39  ;;  %v5825_v31 = vld [vmem:[#allocation29_spill] sm:$0xff]  ;;  %v5826_v9 = vld [vmem:[#allocation3_spill] sm:$0xff] }
 0x232   : > { %v2463_v17 = vpack.c.bf16 %v2234_v42, %v2953_v51  ;;  %v2462_v7 = vpack.c.bf16 %v2162_v61, %v2952_v11  ;;  %v5316_v21 = vpop.f32.mrb[18].mxu1  ;;  %v2115_v14 = vsel %vm2099_vm3, %v5825_v31, %v1622_v19  ;;  %v2213_v13 = vsel %vm2124_vm4, %v2189_v52, %v1980_v47 }
 0x233   : > { %v1804_v15 = vpop.permute.xlu1 %1803  ;;  %2066 = vrot.lane.b32.xlu0 %v5144_v56, %s3254_s6  ;;  %v3100_v48 = vpop.f32.mrb[19].mxu1  ;;  %s193_s6 = smul.u32 18, %s3288_s16 }
 0x234   : > { %2712 = vmatprep.mubr.bf16.mxu0 %v2463_v17  ;;  %v2140_v48 = vsel %vm2124_vm4, %v2115_v14, %v5297_v12 }
 0x235   : > { %v1620_v5 = vpop.permute.xlu0 %1619  ;;  %2713 = vmatmul.mubr.bf16.gmra.mrb[16].mxu0 %v2462_v7  ;;  %v2165_v47 = vsel %vm2149_vm5, %v2140_v48, %v1804_v15  ;;  %p194_p4 = scmp.lt.s32.totalorder %s193_s6, 35 }
 0x236   : > { %v2114_v11 = vsel %vm2099_vm3, %v5826_v9, %v1620_v5  ;;  %v5827_v5 = vld [vmem:[#allocation15_spill] sm:$0xff] }
 0x237   : > { %v1978_v40 = vpop.permute.xlu1 %1977  ;;  %s5836_s6 = smov (!%p194_p4, %s193_s6), 35 }
 0x238   : > { %s2939_s7 = sshll.u32 %s5836_s6, 3 }
 0x239   : > { %v5320_v28 = vpop.f32.mrb[20].mxu1  ;;  %v1904_v35 = vpop.permute.xlu0 %1903  ;;  %s5430_s27 = scalar_lea.vmem %s5493_s4, %s2939_s7 }
 0x23a   : > { %v3103_v4 = vpop.f32.mrb[21].mxu1  ;;  %v2188_v51 = vsel %vm2099_vm3, %v4933_v36, %v1904_v35 }
 0x23b   : > { %v1618_v53 = vpop.permute.xlu1 %1617  ;;  %v5322_v58 = vpop.f32.mrb[22].mxu1  ;;  %v2212_v42 = vsel %vm2124_vm4, %v2188_v51, %v1978_v40  ;;  %v5828_v40 = vld [vmem:[#allocation4_spill] sm:$0xff] }
 0x23c   : > { %v3104_v46 = vpop.f32.mrb[23].mxu1  ;;  %v2113_v36 = vsel %vm2099_vm3, %v5827_v5, %v1618_v53 }
 0x23d   : > { %v1728_v24 = vpop.permute.xlu0 %1727 }
 0x23e   : > { %v2139_v61 = vsel %vm2124_vm4, %v2114_v11, %v1728_v24 }
 0x23f   : > { %v1976_v23 = vpop.permute.xlu1 %1975 }
 0x241   : > { %v5324_v43 = vpop.f32.mrb[24].mxu1  ;;  %v1902_v34 = vpop.permute.xlu0 %1901 }
 0x242   : > { %v3107_v10 = vpop.f32.mrb[25].mxu1  ;;  %v2187_v4 = vsel %vm2099_vm3, %v5828_v40, %v1902_v34 }
 0x243   : > { %v1726_v6 = vpop.permute.xlu1 %1725  ;;  %v5326_v2 = vpop.f32.mrb[26].mxu1  ;;  %v2211_v24 = vsel %vm2124_vm4, %v2187_v4, %v1976_v23 }
 0x244   : > { %v3108_v0 = vpop.f32.mrb[27].mxu1  ;;  %v2138_v46 = vsel %vm2124_vm4, %v2113_v36, %v1726_v6 }
 0x245   : > { %v2055_v16 = vpop.permute.xlu0 %2054 }
 0x246   : > { %v2237_v17 = vsel %vm2149_vm5, %v2213_v13, %v2055_v16 }
 0x247   : > { %v1800_v30 = vpop.permute.xlu1 %1799  ;;  %v2325_v10 = vcombine.low %v2165_v47, %v2237_v17 }
 0x248   : > { %v2163_v0 = vsel %vm2149_vm5, %v2138_v46, %v1800_v30 }
 0x249   : > { %v5328_v62 = vpop.f32.mrb[28].mxu1  ;;  %v1802_v45 = vpop.permute.xlu0 %1801 }
 0x24a   : > { %v3111_v22 = vpop.f32.mrb[29].mxu1  ;;  %v2164_v39 = vsel %vm2149_vm5, %v2139_v61, %v1802_v45 }
 0x24b   : > { %v1912_v55 = vpop.permute.xlu1 %1911  ;;  %v5330_v54 = vpop.f32.mrb[30].mxu1  ;;  %v2954_v34 = vcombine.low %v2163_v0, %v2164_v39 }
 0x24c   : > { %v3112_v57 = vpop.f32.mrb[31].mxu1 }
 0x24d   : > { %v2053_v25 = vpop.permute.xlu0 %2052 }
 0x24e   : > { %v2236_v19 = vsel %vm2149_vm5, %v2212_v42, %v2053_v25 }
 0x24f   : > { %v1628_v7 = vpop.permute.xlu1 %1627  ;;  %v2323_v35 = vcombine.high %v2164_v39, %v2236_v19  ;;  %v2957_v52 = vcombine.high %v2236_v19, %v2325_v10  ;;  %v2192_v39 = vsel %vm2099_vm3, %v5134_v44, %v1912_v55 }
 0x250   : > { %v2118_v5 = vsel %vm2099_vm3, %v4570_v3, %v1628_v7 }
 0x251   : > { %v5357_v16 = vpop.f32.mrb[32].mxu1  ;;  %v2051_v45 = vpop.permute.xlu0 %2050  ;;  %v2956_v53 = vcombine.low %v2323_v35, %v2165_v47 }
 0x252   : > { %v3115_v12 = vpop.f32.mrb[33].mxu1  ;;  %v2235_v22 = vsel %vm2149_vm5, %v2211_v24, %v2051_v45  ;;  %v5829_v24 = vld [vmem:[#allocation32_spill] sm:$0xff] }
 0x253   : > { %v1986_v41 = vpop.permute.xlu1 %1985  ;;  %v2955_v15 = vcombine.low %v2235_v22, %v2236_v19  ;;  %v5360_v31 = vpop.f32.mrb[34].mxu1  ;;  %v2465_v23 = vpack.c.bf16 %v2956_v53, %v2954_v34 }
 0x254   : > { %v3116_v14 = vpop.f32.mrb[35].mxu1  ;;  %v2216_v47 = vsel %vm2124_vm4, %v2192_v39, %v1986_v41  ;;  %v5830_v41 = vld [vmem:[#allocation10_spill] sm:$0xff] }
 0x255   : > { %v1910_v6 = vpop.permute.xlu0 %1909  ;;  %v2466_v9 = vpack.c.bf16 %v2957_v52, %v2955_v15  ;;  %v5831_v15 = vld [vmem:[#allocation38_spill] sm:$0xff] }
 0x256   : > { %v2191_v35 = vsel %vm2099_vm3, %v5005_v8, %v1910_v6 }
 0x257   : > { %v1736_v11 = vpop.permute.xlu1 %1735  ;;  %2720 = vmatprep.mubr.bf16.mxu0 %v2466_v9 }
 0x258   : > { %2721 = vmatmul.mubr.bf16.gmra.mrb[20].mxu0 %v2465_v23  ;;  %v2143_v0 = vsel %vm2124_vm4, %v2118_v5, %v1736_v11 }
 0x259   : > { %v1626_v30 = vpop.permute.xlu0 %1625 }
 0x25a   : > { %v2117_v10 = vsel %vm2099_vm3, %v5829_v24, %v1626_v30 }
 0x25b   : > { %v2059_v51 = vpop.permute.xlu1 %2058 }
 0x25d   : > { %v1984_v57 = vpop.permute.xlu0 %1983 }
 0x25e   : > { %v2215_v44 = vsel %vm2124_vm4, %v2191_v35, %v1984_v57  ;;  %v5832_v35 = vld [vmem:[#allocation24_spill] sm:$0xff] }
 0x25f   : > { %v1808_v13 = vpop.permute.xlu1 %1807  ;;  %v2239_v7 = vsel %vm2149_vm5, %v2215_v44, %v2059_v51 }
 0x261   : > { %v1734_v42 = vpop.permute.xlu0 %1733 }
 0x262   : > { %v2142_v3 = vsel %vm2124_vm4, %v2117_v10, %v1734_v42 }
 0x263   : > { %v3200_v61 = vpop.permute.xlu1 %3199  ;;  %v2167_v22 = vsel %vm2149_vm5, %v2142_v3, %v1808_v13 }
 0x264   : > { %v3202_v45 = vunpack.i.h.bf16 %v3200_v61  ;;  %v3201_v12 = vunpack.i.l.bf16 %v3200_v61 }
 0x265   : > { %v3195_v25 = vpop.permute.xlu0 %3194 }
 0x266   : > { %v3197_v40 = vunpack.i.h.bf16 %v3195_v25  ;;  %v3196_v4 = vunpack.i.l.bf16 %v3195_v25 }
 0x267   : > { %v1630_v17 = vpop.permute.xlu1 %1629 }
 0x268   : > { %v2116_v52 = vsel %vm2099_vm3, %v5830_v41, %v3197_v40  ;;  %v2190_v34 = vsel %vm2099_vm3, %v5831_v15, %v3196_v4 }
 0x269   : > { %v2061_v48 = vpop.permute.xlu0 %2060  ;;  %v2141_v23 = vsel %vm2124_vm4, %v2116_v52, %v3202_v45  ;;  %v2214_v11 = vsel %vm2124_vm4, %v2190_v34, %v3201_v12 }
 0x26a   : > { %v2240_v55 = vsel %vm2149_vm5, %v2216_v47, %v2061_v48  ;;  %v2119_v47 = vsel %vm2099_vm3, %v5832_v35, %v1630_v17 }
 0x26b   : > { %v1738_v19 = vpop.permute.xlu1 %1737  ;;  %v2959_v30 = vcombine.low %v2239_v7, %v2240_v55 }
 0x26c   : > { %v2144_v24 = vsel %vm2124_vm4, %v2119_v47, %v1738_v19 }
 0x26d   : > { %v1810_v36 = vpop.permute.xlu0 %1809 }
 0x26e   : > { %v2168_v8 = vsel %vm2149_vm5, %v2143_v0, %v1810_v36 }
 0x26f   : > { %v1812_v46 = vpop.permute.xlu1 %1811  ;;  %v2958_v57 = vcombine.low %v2167_v22, %v2168_v8  ;;  %v2331_v22 = vcombine.high %v2168_v8, %v2240_v55 }
 0x270   : > { %v2169_v45 = vsel %vm2149_vm5, %v2144_v24, %v1812_v46 }
 0x271   : > { %v3205_v53 = vpop.permute.xlu0 %3204  ;;  %v2960_v34 = vcombine.low %v2331_v22, %v2169_v45 }
 0x272   : > { %v3207_v14 = vunpack.i.h.bf16 %v3205_v53  ;;  %v3206_v6 = vunpack.i.l.bf16 %v3205_v53 }
 0x273   : > { %v3210_v9 = vpop.permute.xlu1 %3209 }
 0x274   : > { %v2238_v51 = vsel %vm2149_vm5, %v2214_v11, %v3206_v6  ;;  %v2166_v13 = vsel %vm2149_vm5, %v2141_v23, %v3207_v14  ;;  %v3212_v12 = vunpack.i.h.bf16 %v3210_v9  ;;  %v3211_v44 = vunpack.i.l.bf16 %v3210_v9 }
 0x275   : > { %v1914_v42 = vpop.permute.xlu0 %1913  ;;  %v2469_v61 = vpack.c.bf16 %v2959_v30, %v2238_v51  ;;  %v2468_v25 = vpack.c.bf16 %v2958_v57, %v2166_v13 }
 0x276   : > { %v2193_v36 = vsel %vm2099_vm3, %v5051_v63, %v1914_v42  ;;  %v2120_v17 = vsel %vm2099_vm3, %v4605_v26, %v3212_v12  ;;  %v2194_v52 = vsel %vm2099_vm3, %v5091_v50, %v3211_v44 }
 0x277   : > { %v3220_v48 = vpop.permute.xlu1 %3219  ;;  %2728 = vmatprep.mubr.bf16.mxu0 %v2469_v61 }
 0x278   : > { %2729 = vmatmul.mubr.bf16.gmra.mrb[24].mxu0 %v2468_v25  ;;  %v3222_v19 = vunpack.i.h.bf16 %v3220_v48  ;;  %v3221_v15 = vunpack.i.l.bf16 %v3220_v48 }
 0x279   : > { %v1988_v39 = vpop.permute.xlu0 %1987 }
 0x27a   : > { %v2217_v40 = vsel %vm2124_vm4, %v2193_v36, %v1988_v39 }
 0x27b   : > { %v1922_v5 = vpop.permute.xlu1 %1921 }
 0x27c   : > { %v2197_v36 = vsel %vm2099_vm3, %v5144_v56, %v1922_v5 }
 0x27d   : > { %v2063_v4 = vpop.permute.xlu0 %2062 }
 0x27e   : > { %v2241_v10 = vsel %vm2149_vm5, %v2217_v40, %v2063_v4 }
 0x27f   : > { %v1746_v0 = vpop.permute.xlu1 %1745  ;;  %v2333_v3 = vcombine.low %v2169_v45, %v2241_v10 }
 0x281   : > { %v3215_v7 = vpop.permute.xlu0 %3214  ;;  %v2961_v14 = vcombine.high %v2240_v55, %v2333_v3 }
 0x282   : > { %v3217_v53 = vunpack.i.h.bf16 %v3215_v7  ;;  %v3216_v63 = vunpack.i.l.bf16 %v3215_v7 }
 0x283   : > { %v1996_v41 = vpop.permute.xlu1 %1995 }
 0x284   : > { %v2145_v46 = vsel %vm2124_vm4, %v2120_v17, %v3217_v53  ;;  %v2218_v6 = vsel %vm2124_vm4, %v2194_v52, %v3216_v63  ;;  %v2221_v4 = vsel %vm2124_vm4, %v2197_v36, %v1996_v41 }
 0x285   : > { %v1638_v9 = vpop.permute.xlu0 %1637  ;;  %v2242_v8 = vsel %vm2149_vm5, %v2218_v6, %v3221_v15  ;;  %v2170_v23 = vsel %vm2149_vm5, %v2145_v46, %v3222_v19 }
 0x286   : > { %v2472_v11 = vpack.c.bf16 %v2242_v8, %v2961_v14  ;;  %v2471_v30 = vpack.c.bf16 %v2170_v23, %v2960_v34  ;;  %v2123_v35 = vsel %vm2099_vm3, %v5795_v20, %v1638_v9  ;;  %v5833_v23 = vld [vmem:[#allocation27_spill] sm:$0xff] }
 0x287   : > { %v1820_v57 = vpop.permute.xlu1 %1819  ;;  %v2148_v44 = vsel %vm2124_vm4, %v2123_v35, %v1746_v0 }
 0x288   : > { %2736 = vmatprep.mubr.bf16.mxu0 %v2472_v11  ;;  %v2173_v3 = vsel %vm2149_vm5, %v2148_v44, %v1820_v57  ;;  %v5834_v57 = vld [vmem:[#allocation19_spill] sm:$0xff] }
 0x289   : > { %v1636_v26 = vpop.permute.xlu0 %1635  ;;  %2737 = vmatmul.mubr.bf16.gmra.mrb[28].mxu0 %v2471_v30 }
 0x28a   : > { %v2122_v47 = vsel %vm2099_vm3, %v4632_v37, %v1636_v26 }
 0x28b   : > { %v1994_v50 = vpop.permute.xlu1 %1993 }
 0x28d   : > { %v1920_v51 = vpop.permute.xlu0 %1919 }
 0x28e   : > { %v2196_v40 = vsel %vm2099_vm3, %v5165_v29, %v1920_v51 }
 0x28f   : > { %v1634_v13 = vpop.permute.xlu1 %1633  ;;  %v2220_v24 = vsel %vm2124_vm4, %v2196_v40, %v1994_v50 }
 0x290   : > { %v2121_v37 = vsel %vm2099_vm3, %v4609_v27, %v1634_v13 }
 0x291   : > { %v1744_v42 = vpop.permute.xlu0 %1743 }
 0x292   : > { %v2147_v10 = vsel %vm2124_vm4, %v2122_v47, %v1744_v42 }
 0x293   : > { %v1992_v61 = vpop.permute.xlu1 %1991 }
 0x295   : > { %v1918_v55 = vpop.permute.xlu0 %1917 }
 0x296   : > { %v2195_v7 = vsel %vm2099_vm3, %v5067_v60, %v1918_v55 }
 0x297   : > { %v1742_v48 = vpop.permute.xlu1 %1741  ;;  %v2219_v53 = vsel %vm2124_vm4, %v2195_v7, %v1992_v61 }
 0x298   : > { %v2146_v22 = vsel %vm2124_vm4, %v2121_v37, %v1742_v48 }
 0x299   : > { %v2071_v25 = vpop.permute.xlu0 %2070 }
 0x29a   : > { %v2245_v12 = vsel %vm2149_vm5, %v2221_v4, %v2071_v25 }
 0x29b   : > { %v1816_v5 = vpop.permute.xlu1 %1815  ;;  %v2341_v63 = vcombine.low %v2173_v3, %v2245_v12 }
 0x29c   : > { %v2171_v41 = vsel %vm2149_vm5, %v2146_v22, %v1816_v5 }
 0x29d   : > { %v1818_v39 = vpop.permute.xlu0 %1817 }
 0x29e   : > { %v2172_v56 = vsel %vm2149_vm5, %v2147_v10, %v1818_v39 }
 0x29f   : > { %v2962_v15 = vcombine.low %v2171_v41, %v2172_v56 }
 0x2a1   : > { %v2069_v45 = vpop.permute.xlu0 %2068 }
 0x2a2   : > { %v2244_v20 = vsel %vm2149_vm5, %v2220_v24, %v2069_v45 }
 0x2a3   : > { %v2339_v29 = vcombine.high %v2172_v56, %v2244_v20  ;;  %v2965_v19 = vcombine.high %v2244_v20, %v2341_v63 }
 0x2a5   : > { %v2067_v17 = vpop.permute.xlu0 %2066  ;;  %v2964_v52 = vcombine.low %v2339_v29, %v2173_v3 }
 0x2a6   : > { %v2243_v0 = vsel %vm2149_vm5, %v2219_v53, %v2067_v17 }
 0x2a7   : > { %v2963_v27 = vcombine.low %v2243_v0, %v2244_v20  ;;  %v2474_v14 = vpack.c.bf16 %v2964_v52, %v2962_v15 }
 0x2a9   : > { %v2475_v34 = vpack.c.bf16 %v2965_v19, %v2963_v27 }
 0x2ab   : > { %2744 = vmatprep.mubr.bf16.mxu0 %v2475_v34 }
 0x2ac   : > { %2745 = vmatmul.mubr.bf16.gmra.mrb[32].mxu0 %v2474_v14 }
 0x2cf   : > { %v3012_v60 = vpop.f32.mrb[0].mxu0 }
 0x2d0   : > { %v3013_v46 = vpop.f32.mrb[1].mxu0 }
 0x2d1   : > { %v3014_v6 = vadd.f32 %v3013_v46, %v3012_v60  ;;  %v3015_v9 = vpop.f32.mrb[2].mxu0 }
 0x2d2   : > { %v3016_v8 = vpop.f32.mrb[3].mxu0 }
 0x2d3   : > { %v2788_v11 = vadd.f32 %v3014_v6, %v5833_v23  ;;  %v3017_v30 = vadd.f32 %v3016_v8, %v3015_v9 }
 0x2d5   : > { %2858 = vst.msk [vmem:[%s5430_s27] sm:$0xff] %vm2124_vm4, %v2788_v11  ;;  %v2791_v26 = vadd.f32 %v3017_v30, %v5834_v57 }
 0x2d7   : > { %2859 = vst.msk [vmem:[%s5430_s27 + $0x8] sm:$0xff] %vm2124_vm4, %v2791_v26  ;;  %v3018_v50 = vpop.f32.mrb[4].mxu0 }
 0x2d8   : > { %v3019_v51 = vpop.f32.mrb[5].mxu0 }
 0x2d9   : > { %v3020_v13 = vadd.f32 %v3019_v51, %v3018_v50  ;;  %v3021_v42 = vpop.f32.mrb[6].mxu0 }
 0x2da   : > { %v3022_v55 = vpop.f32.mrb[7].mxu0 }
 0x2db   : > { %v2796_v61 = vadd.f32 %v3020_v13, %v5146_v49  ;;  %v3023_v25 = vadd.f32 %v3022_v55, %v3021_v42 }
 0x2dd   : > { %2860 = vst.msk [vmem:[%s5430_s27 + $0x10] sm:$0xff] %vm2124_vm4, %v2796_v61  ;;  %v2799_v48 = vadd.f32 %v3023_v25, %v5154_v38 }
 0x2df   : > { %2861 = vst.msk [vmem:[%s5430_s27 + $0x18] sm:$0xff] %vm2124_vm4, %v2799_v48 }
 0x2e4   : > { %v3024_v39 = vpop.f32.mrb[8].mxu0 }
 0x2e5   : > { %v3025_v36 = vpop.f32.mrb[9].mxu0 }
 0x2e6   : > { %v3026_v35 = vadd.f32 %v3025_v36, %v3024_v39  ;;  %v3027_v47 = vpop.f32.mrb[10].mxu0 }
 0x2e7   : > { %v3028_v40 = vpop.f32.mrb[11].mxu0 }
 0x2e8   : > { %v2804_v4 = vadd.f32 %v3026_v35, %v5217_v32  ;;  %v3029_v24 = vadd.f32 %v3028_v40, %v3027_v47 }
 0x2ea   : > { %2862 = vst.msk [vmem:[%s5430_s27 + $0x20] sm:$0xff] %vm2124_vm4, %v2804_v4  ;;  %v2807_v49 = vadd.f32 %v3029_v24, %v5225_v18 }
 0x2ec   : > { %2863 = vst.msk [vmem:[%s5430_s27 + $0x28] sm:$0xff] %vm2124_vm4, %v2807_v49 }
 0x2f7   : > { %v3030_v10 = vpop.f32.mrb[12].mxu0 }
 0x2f8   : > { %v3031_v38 = vpop.f32.mrb[13].mxu0 }
 0x2f9   : > { %v3032_v45 = vadd.f32 %v3031_v38, %v3030_v10  ;;  %v3033_v12 = vpop.f32.mrb[14].mxu0 }
 0x2fa   : > { %v3034_v56 = vpop.f32.mrb[15].mxu0 }
 0x2fb   : > { %v2812_v5 = vadd.f32 %v3032_v45, %v5292_v59  ;;  %v3035_v20 = vadd.f32 %v3034_v56, %v3033_v12 }
 0x2fd   : > { %2864 = vst.msk [vmem:[%s5430_s27 + $0x30] sm:$0xff] %vm2124_vm4, %v2812_v5  ;;  %v2815_v32 = vadd.f32 %v3035_v20, %v5300_v33 }
 0x2ff   : > { %2865 = vst.msk [vmem:[%s5430_s27 + $0x38] sm:$0xff] %vm2124_vm4, %v2815_v32 }
 0x308   : > { %v3036_v44 = vpop.f32.mrb[16].mxu0 }
 0x309   : > { %v3037_v18 = vpop.f32.mrb[17].mxu0 }
 0x30a   : > { %v3038_v37 = vadd.f32 %v3037_v18, %v3036_v44  ;;  %v3039_v29 = vpop.f32.mrb[18].mxu0 }
 0x30b   : > { %v3040_v3 = vpop.f32.mrb[19].mxu0 }
 0x30c   : > { %v2820_v7 = vadd.f32 %v3038_v37, %v5312_v1  ;;  %v3041_v22 = vadd.f32 %v3040_v3, %v3039_v29 }
 0x30e   : > { %2866 = vst.msk [vmem:[%s5430_s27 + $0x40] sm:$0xff] %vm2124_vm4, %v2820_v7  ;;  %v2823_v59 = vadd.f32 %v3041_v22, %v5316_v21 }
 0x310   : > { %2867 = vst.msk [vmem:[%s5430_s27 + $0x48] sm:$0xff] %vm2124_vm4, %v2823_v59 }
 0x32b   : > { %v3042_v53 = vpop.f32.mrb[20].mxu0 }
 0x32c   : > { %v3043_v33 = vpop.f32.mrb[21].mxu0 }
 0x32d   : > { %v3044_v63 = vadd.f32 %v3043_v33, %v3042_v53  ;;  %v3045_v41 = vpop.f32.mrb[22].mxu0 }
 0x32e   : > { %v3046_v17 = vpop.f32.mrb[23].mxu0 }
 0x32f   : > { %v2828_v0 = vadd.f32 %v3044_v63, %v5320_v28  ;;  %v3047_v52 = vadd.f32 %v3046_v17, %v3045_v41 }
 0x331   : > { %2868 = vst.msk [vmem:[%s5430_s27 + $0x50] sm:$0xff] %vm2124_vm4, %v2828_v0  ;;  %v2831_v1 = vadd.f32 %v3047_v52, %v5322_v58 }
 0x333   : > { %2869 = vst.msk [vmem:[%s5430_s27 + $0x58] sm:$0xff] %vm2124_vm4, %v2831_v1 }
 0x34b   : > { %v3048_v19 = vpop.f32.mrb[24].mxu0 }
 0x34c   : > { %v3049_v21 = vpop.f32.mrb[25].mxu0 }
 0x34d   : > { %v3050_v27 = vadd.f32 %v3049_v21, %v3048_v19  ;;  %v3051_v15 = vpop.f32.mrb[26].mxu0 }
 0x34e   : > { %v3052_v34 = vpop.f32.mrb[27].mxu0 }
 0x34f   : > { %v2836_v14 = vadd.f32 %v3050_v27, %v5324_v43  ;;  %v3053_v60 = vadd.f32 %v3052_v34, %v3051_v15 }
 0x351   : > { %2870 = vst.msk [vmem:[%s5430_s27 + $0x60] sm:$0xff] %vm2124_vm4, %v2836_v14  ;;  %v2839_v28 = vadd.f32 %v3053_v60, %v5326_v2 }
 0x353   : > { %2871 = vst.msk [vmem:[%s5430_s27 + $0x68] sm:$0xff] %vm2124_vm4, %v2839_v28 }
 0x35c   : > { %v3054_v46 = vpop.f32.mrb[28].mxu0 }
 0x35d   : > { %v3055_v58 = vpop.f32.mrb[29].mxu0 }
 0x35e   : > { %v3056_v6 = vadd.f32 %v3055_v58, %v3054_v46  ;;  %v3057_v9 = vpop.f32.mrb[30].mxu0 }
 0x35f   : > { %v3058_v8 = vpop.f32.mrb[31].mxu0 }
 0x360   : > { %v2844_v23 = vadd.f32 %v3056_v6, %v5328_v62  ;;  %v3059_v11 = vadd.f32 %v3058_v8, %v3057_v9 }
 0x362   : > { %2872 = vst.msk [vmem:[%s5430_s27 + $0x70] sm:$0xff] %vm2124_vm4, %v2844_v23  ;;  %v2847_v43 = vadd.f32 %v3059_v11, %v5330_v54 }
 0x364   : > { %2873 = vst.msk [vmem:[%s5430_s27 + $0x78] sm:$0xff] %vm2124_vm4, %v2847_v43 }
 0x37f   : > { %v3060_v30 = vpop.f32.mrb[32].mxu0 }
 0x380   : > { %v3061_v2 = vpop.f32.mrb[33].mxu0 }
 0x381   : > { %v3062_v57 = vadd.f32 %v3061_v2, %v3060_v30  ;;  %v3063_v26 = vpop.f32.mrb[34].mxu0 }
 0x382   : > { %v3064_v50 = vpop.f32.mrb[35].mxu0 }
 0x383   : > { %v2852_v51 = vadd.f32 %v3062_v57, %v5357_v16  ;;  %v3065_v13 = vadd.f32 %v3064_v50, %v3063_v26 }
 0x385   : > { %2874 = vst.msk [vmem:[%s5430_s27 + $0x80] sm:$0xff] %vm2124_vm4, %v2852_v51  ;;  %v2855_v42 = vadd.f32 %v3065_v13, %v5360_v31 }
 0x387   : > { %2875 = vst.msk [vmem:[%s5430_s27 + $0x88] sm:$0xff] %vm2124_vm4, %v2855_v42 }
 0x388 PF: > { %s14_s15 = sadd.s32 1, %s3249_s15  }
 0x389   : > { %p11_p5 = scmp.ge.s32.totalorder %s14_s15, 4  }
 0x38b   :  { %13 = sbr.rel (!%p11_p5) target bundleno = 1 (0x1), region = 66 }

</bundles_post_ra>
